<compile_context>
chip_gen: v5e
topology: v5e:2x2
jax: 0.10.0
libtpu: 0.0.40
codegen_flags: <defaults>
</compile_context>

<pallas_src>
import functools

import jax
import jax.numpy as jnp
from jax.experimental import pallas as pl
from jax.experimental.pallas import tpu as pltpu

BN_EPS = 1e-5
TILE_N = 512                      # batch tile (multiple of 128)
VMEM_LIMIT = 48 * 1024 * 1024     # fits v7x's 64 MiB, generous on v5e/v6e


def _round_up(x, m):
    return (x + m - 1) // m * m


def _pad2(a, rows, cols):
    return jnp.pad(a, ((0, rows - a.shape[0]), (0, cols - a.shape[1])))


# ---------------------------------------------------------------------------
# Stage 1: z1 = x @ W1 (bf16 MXU, f32 acc, bf16 store) + batch sum / sum-sq.
# grid = (batch-split [parallel], batch-tiles [arbitrary: stats reduction]).
# Padded x rows are exactly zero (layer 1 has no bias), so they contribute
# nothing to the z1 statistics -- no masking needed here.
# ---------------------------------------------------------------------------
def _lin_stats_kernel(x_ref, w_ref, z_ref, s_ref, sq_ref):
    jn = pl.program_id(1)

    @pl.when(jn == 0)
    def _():
        s_ref[...] = jnp.zeros_like(s_ref)
        sq_ref[...] = jnp.zeros_like(sq_ref)

    z = jnp.dot(x_ref[...], w_ref[...], preferred_element_type=jnp.float32)
    z_ref[...] = z.astype(z_ref.dtype)                 # bf16 spill to HBM
    s_ref[...] += jnp.sum(z, axis=0, keepdims=True)    # resident f32 partials
    sq_ref[...] += jnp.sum(z * z, axis=0, keepdims=True)


# ---------------------------------------------------------------------------
# Stage 2: h = relu(z1*scale1 + shift1); z2 = h @ W2 (bf16 store) + stats(z2).
# Padded-row stats pollution is removed by a pl.when correction on the single
# last tile, emitted only when the batch actually has padding (trace time).
# ---------------------------------------------------------------------------
def _bn_relu_lin_stats_kernel(z1_ref, scale_ref, shift_ref, w_ref,
                              z2_ref, s_ref, sq_ref, *, n_pad):
    p = pl.program_id(0)
    jn = pl.program_id(1)

    @pl.when(jn == 0)
    def _():
        s_ref[...] = jnp.zeros_like(s_ref)
        sq_ref[...] = jnp.zeros_like(sq_ref)

    # Folded BatchNorm (scale/shift) + ReLU in f32 on the bf16-stored z1.
    h = jnp.maximum(z1_ref[...].astype(jnp.float32) * scale_ref[...]
                    + shift_ref[...], 0.0)
    z = jnp.dot(h.astype(jnp.bfloat16), w_ref[...],
                preferred_element_type=jnp.float32)
    z2_ref[...] = z.astype(z2_ref.dtype)
    s_ref[...] += jnp.sum(z, axis=0, keepdims=True)
    sq_ref[...] += jnp.sum(z * z, axis=0, keepdims=True)

    if n_pad:  # trace-time: only emitted when the batch is padded
        is_last = jnp.logical_and(p == pl.num_programs(0) - 1,
                                  jn == pl.num_programs(1) - 1)

        @pl.when(is_last)
        def _():
            # z1's padded rows are exactly 0, but shift/ReLU makes their h
            # rows (hence their z2 rows) nonzero: remove their contribution
            # from the batch statistics.  Static slice, single grid step.
            zp = z[z.shape[0] - n_pad:, :]
            s_ref[...] -= jnp.sum(zp, axis=0, keepdims=True)
            sq_ref[...] -= jnp.sum(zp * zp, axis=0, keepdims=True)


# ---------------------------------------------------------------------------
# Stage 3: out = relu(z2*scale2 + shift2) @ W3 + b3 (bias folded in epilogue).
# Both grid axes fully parallel (no cross-tile coupling).
# ---------------------------------------------------------------------------
def _bn_relu_lin_bias_kernel(z_ref, scale_ref, shift_ref, w_ref, bias_ref,
                             o_ref):
    h = jnp.maximum(z_ref[...].astype(jnp.float32) * scale_ref[...]
                    + shift_ref[...], 0.0)
    o_ref[...] = (jnp.dot(h.astype(jnp.bfloat16), w_ref[...],
                          preferred_element_type=jnp.float32)
                  + bias_ref[...]).astype(o_ref.dtype)


def _bn_scale_shift(s_parts, sq_parts, n, gamma, beta, n_split, c):
    """Reduce per-split partial sums and fold BN into scale/shift (f32, XLA)."""
    s = jnp.sum(s_parts.reshape(n_split, c), axis=0, keepdims=True)
    sq = jnp.sum(sq_parts.reshape(n_split, c), axis=0, keepdims=True)
    mu = s / n
    # TODO(synk): E[z^2]-mu^2 can cancel badly when |mu| >> std; switch to a
    # shifted / Welford accumulation if tighter accuracy is ever required.
    var = jnp.maximum(sq / n - mu * mu, 0.0)  # biased var (PyTorch BN training)
    scale = gamma * jax.lax.rsqrt(var + BN_EPS)
    shift = beta - mu * scale
    return scale, shift


def b2d_2d_forward(x, params, *, tile_n=TILE_N):
    """x: (N, C_in) float32. params: pre-transposed weights + BN affines."""
    n, c_in = x.shape
    c_out = params["w3_t"].shape[1]

    cp = _round_up(c_in, 128)            # lane-dense hidden width
    cop = _round_up(c_out, 128)          # lane-dense output width
    tile_n = min(tile_n, _round_up(n, 128))
    num_tiles = -(-n // tile_n)
    np_ = num_tiles * tile_n
    n_pad = np_ - n                      # always < tile_n -> only in last tile
    # 2-way batch split => a real "parallel" grid axis (keeps both v7x
    # TensorCores busy); per-split partial stats are reduced in XLA.
    n_split = 2 if num_tiles % 2 == 0 else 1
    tps = num_tiles // n_split

    f32, bf16 = jnp.float32, jnp.bfloat16
    # NOTE: padded x rows/cols must be exactly zero (layer 1 has no bias) so
    # they contribute nothing to the z1 batch statistics.
    x_p = _pad2(x, np_, cp).astype(bf16)
    w1 = _pad2(params["w1_t"], cp, cp).astype(bf16)
    w2 = _pad2(params["w2_t"], cp, cp).astype(bf16)
    w3 = _pad2(params["w3_t"], cp, cop).astype(bf16)
    g1 = _pad2(params["g1"], 1, cp).astype(f32)
    b1 = _pad2(params["b1"], 1, cp).astype(f32)
    g2 = _pad2(params["g2"], 1, cp).astype(f32)
    b2 = _pad2(params["b2"], 1, cp).astype(f32)
    b3 = _pad2(params["b3"], 1, cop).astype(f32)

    cp_red = pltpu.CompilerParams(
        dimension_semantics=("parallel", "arbitrary"),
        vmem_limit_bytes=VMEM_LIMIT)
    cp_par = pltpu.CompilerParams(
        dimension_semantics=("parallel", "parallel"),
        vmem_limit_bytes=VMEM_LIMIT)

    grid = (n_split, tps)
    batch_blk = lambda p, jn: (p * tps + jn, 0)   # streaming batch tiles
    const_blk = lambda p, jn: (0, 0)              # VMEM-resident weights/vecs
    stats_blk = lambda p, jn: (0, p)              # per-split resident partials

    # ------------------ stage 1 ------------------
    z1, s1, sq1 = pl.pallas_call(
        _lin_stats_kernel,
        out_shape=(jax.ShapeDtypeStruct((np_, cp), bf16),
                   jax.ShapeDtypeStruct((1, n_split * cp), f32),
                   jax.ShapeDtypeStruct((1, n_split * cp), f32)),
        grid_spec=pltpu.PrefetchScalarGridSpec(
            num_scalar_prefetch=0,
            grid=grid,
            in_specs=[pl.BlockSpec((tile_n, cp), batch_blk),
                      pl.BlockSpec((cp, cp), const_blk)],
            out_specs=(pl.BlockSpec((tile_n, cp), batch_blk),
                       pl.BlockSpec((1, cp), stats_blk),
                       pl.BlockSpec((1, cp), stats_blk))),
        compiler_params=cp_red,
        cost_estimate=pl.CostEstimate(
            flops=2 * np_ * cp * cp, transcendentals=0,
            bytes_accessed=np_ * cp * 2 + cp * cp * 2 + np_ * cp * 2),
    )(x_p, w1)
    scale1, shift1 = _bn_scale_shift(s1, sq1, n, g1, b1, n_split, cp)

    # ------------------ stage 2 ------------------
    z2, s2, sq2 = pl.pallas_call(
        functools.partial(_bn_relu_lin_stats_kernel, n_pad=n_pad),
        out_shape=(jax.ShapeDtypeStruct((np_, cp), bf16),
                   jax.ShapeDtypeStruct((1, n_split * cp), f32),
                   jax.ShapeDtypeStruct((1, n_split * cp), f32)),
        grid_spec=pltpu.PrefetchScalarGridSpec(
            num_scalar_prefetch=0,
            grid=grid,
            in_specs=[pl.BlockSpec((tile_n, cp), batch_blk),
                      pl.BlockSpec((1, cp), const_blk),
                      pl.BlockSpec((1, cp), const_blk),
                      pl.BlockSpec((cp, cp), const_blk)],
            out_specs=(pl.BlockSpec((tile_n, cp), batch_blk),
                       pl.BlockSpec((1, cp), stats_blk),
                       pl.BlockSpec((1, cp), stats_blk))),
        compiler_params=cp_red,
        cost_estimate=pl.CostEstimate(
            flops=2 * np_ * cp * cp, transcendentals=0,
            bytes_accessed=np_ * cp * 2 + cp * cp * 2 + np_ * cp * 2),
    )(z1, scale1, shift1, w2)
    scale2, shift2 = _bn_scale_shift(s2, sq2, n, g2, b2, n_split, cp)

    # ------------------ stage 3 ------------------
    out_p = pl.pallas_call(
        _bn_relu_lin_bias_kernel,
        out_shape=jax.ShapeDtypeStruct((np_, cop), f32),
        grid_spec=pltpu.PrefetchScalarGridSpec(
            num_scalar_prefetch=0,
            grid=grid,
            in_specs=[pl.BlockSpec((tile_n, cp), batch_blk),
                      pl.BlockSpec((1, cp), const_blk),
                      pl.BlockSpec((1, cp), const_blk),
                      pl.BlockSpec((cp, cop), const_blk),
                      pl.BlockSpec((1, cop), const_blk)],
            out_specs=pl.BlockSpec((tile_n, cop), batch_blk)),
        compiler_params=cp_par,
        cost_estimate=pl.CostEstimate(
            flops=2 * np_ * cp * cop, transcendentals=0,
            bytes_accessed=np_ * cp * 2 + cp * cop * 2 + np_ * cop * 4),
    )(z2, scale2, shift2, w3, b3)

    return out_p[:n, :c_out]


def init_params(key, in_channels, out_channels):
    k1, k2, k3, k4 = jax.random.split(key, 4)
    scale_in = 1.0 / jnp.sqrt(in_channels)
    # Linear weights stored pre-transposed: (in, out).
    w1_t = jax.random.uniform(k1, (in_channels, in_channels), jnp.float32,
                              -scale_in, scale_in)
    w2_t = jax.random.uniform(k2, (in_channels, in_channels), jnp.float32,
                              -scale_in, scale_in)
    w3_t = jax.random.uniform(k3, (in_channels, out_channels), jnp.float32,
                              -scale_in, scale_in)
    b3 = jax.random.uniform(k4, (1, out_channels), jnp.float32,
                            -scale_in, scale_in)
    # BatchNorm1d affine init: gamma=1, beta=0.
    g1 = jnp.ones((1, in_channels), jnp.float32)
    b1 = jnp.zeros((1, in_channels), jnp.float32)
    g2 = jnp.ones((1, in_channels), jnp.float32)
    b2 = jnp.zeros((1, in_channels), jnp.float32)
    return dict(w1_t=w1_t, g1=g1, b1=b1,
                w2_t=w2_t, g2=g2, b2=b2,
                w3_t=w3_t, b3=b3)


def reference_forward(x, p):
    """Pure-JAX reference mirroring the kernel numerics (bf16 matmuls, f32
    batch stats, bf16-quantized activation spills between stages)."""
    f32, bf16 = jnp.float32, jnp.bfloat16

    def lin(a, w):
        return jnp.dot(a.astype(bf16), w.astype(bf16),
                       preferred_element_type=f32)

    def bn_relu(z, g, b):
        mu = jnp.mean(z, axis=0, keepdims=True)
        var = jnp.maximum(jnp.mean(z * z, axis=0, keepdims=True) - mu * mu, 0.0)
        scale = g * jax.lax.rsqrt(var + BN_EPS)
        shift = b - mu * scale
        # kernel stores z in bf16 between stages
        return jnp.maximum(z.astype(bf16).astype(f32) * scale + shift, 0.0)

    h = bn_relu(lin(x, p["w1_t"]), p["g1"], p["b1"])
    h = bn_relu(lin(h, p["w2_t"]), p["g2"], p["b2"])
    return lin(h, p["w3_t"]) + p["b3"]


if __name__ == "__main__":
    key = jax.random.PRNGKey(0)

    def run_case(n, c_in, c_out, tile_n, case_key):
        kx, kp = jax.random.split(case_key)
        x = jax.random.normal(kx, (n, c_in), jnp.float32)
        params = init_params(kp, c_in, c_out)
        fwd = jax.jit(functools.partial(b2d_2d_forward, tile_n=tile_n))
        out = jax.block_until_ready(fwd(x, params))
        ref = reference_forward(x, params)
        assert out.shape == (n, c_out)
        err = float(jnp.max(jnp.abs(out - ref)))
        assert jnp.allclose(out, ref, atol=1e-2, rtol=1e-2), err
        return out

    k1, k2 = jax.random.split(key)
    # Case A: odd tile count -> single split, multi-tile stats accumulation
    # over the "arbitrary" axis + padded-row correction on the last tile.
    run_case(300, 160, 48, 128, k1)
    # Case B: even tile count -> 2-way "parallel" batch split with per-split
    # partial stats reduced in XLA, plus batch padding in the last tile.
    run_case(1000, 256, 64, 256, k2)
    print("KERNEL_OK")
</pallas_src>

<mosaic_0001>
module attributes {stable_mosaic.version = 11 : i64} {
  func.func @_lin_stats_kernel(%arg0: i32, %arg1: i32, %arg2: memref<128x256xbf16, #tpu.memory_space<vmem>>, %arg3: memref<256x256xbf16, #tpu.memory_space<vmem>>, %arg4: memref<128x256xbf16, #tpu.memory_space<vmem>>, %arg5: memref<1x256xf32, #tpu.memory_space<vmem>>, %arg6: memref<1x256xf32, #tpu.memory_space<vmem>>) attributes {dimension_semantics = [#tpu.dimension_semantics<parallel>, #tpu.dimension_semantics<arbitrary>], iteration_bounds = array<i64: 1, 3>, scalar_prefetch = 0 : i64, scratch_operands = 0 : i64, tpu.core_type = #tpu.core_type<tc>, window_params = [{transform_indices = @transform_0, window_bounds = array<i64: 128, 256>}, {pipeline_mode = #tpu.pipeline_mode<synchronous>, transform_indices = @transform_1, window_bounds = array<i64: 256, 256>}, {transform_indices = @transform_2, window_bounds = array<i64: 128, 256>}, {transform_indices = @transform_3, window_bounds = array<i64: 1, 256>}, {transform_indices = @transform_4, window_bounds = array<i64: 1, 256>}]} {
    %c0_i32 = arith.constant 0 : i32
    %0 = arith.cmpi eq, %arg1, %c0_i32 : i32
    %1 = arith.extui %0 : i1 to i32
    %c0_i32_0 = arith.constant 0 : i32
    %2 = arith.cmpi ne, %1, %c0_i32_0 : i32
    scf.if %2 {
      %cst_16 = arith.constant 0.000000e+00 : f32
      %19 = vector.broadcast %cst_16 : f32 to vector<1x256xf32>
      %c0_17 = arith.constant 0 : index
      %c0_18 = arith.constant 0 : index
      %20 = vector.load %arg5[%c0_17, %c0_18] : memref<1x256xf32, #tpu.memory_space<vmem>>, vector<1x256xf32>
      tpu.vector_store %arg5[%c0_17, %c0_18], %19 {strides = array<i32>} : memref<1x256xf32, #tpu.memory_space<vmem>>, vector<1x256xf32>,
      %cst_19 = arith.constant 0.000000e+00 : f32
      %21 = vector.broadcast %cst_19 : f32 to vector<1x256xf32>
      %c0_20 = arith.constant 0 : index
      %c0_21 = arith.constant 0 : index
      %22 = vector.load %arg6[%c0_20, %c0_21] : memref<1x256xf32, #tpu.memory_space<vmem>>, vector<1x256xf32>
      tpu.vector_store %arg6[%c0_20, %c0_21], %21 {strides = array<i32>} : memref<1x256xf32, #tpu.memory_space<vmem>>, vector<1x256xf32>,
    } else {
    }
    %c0 = arith.constant 0 : index
    %c0_1 = arith.constant 0 : index
    %3 = vector.load %arg2[%c0, %c0_1] : memref<128x256xbf16, #tpu.memory_space<vmem>>, vector<128x256xbf16>
    %c0_2 = arith.constant 0 : index
    %c0_3 = arith.constant 0 : index
    %4 = vector.load %arg3[%c0_2, %c0_3] : memref<256x256xbf16, #tpu.memory_space<vmem>>, vector<256x256xbf16>
    %cst = arith.constant dense<0.000000e+00> : vector<128x256xf32>
    %5 = tpu.matmul %3, %4, %cst {dimension_numbers = #tpu.dot_dimension_numbers<[1], [0], [0], [1], [0, 0, 1, 1], [], []>} : vector<128x256xbf16>, vector<256x256xbf16>, vector<128x256xf32> -> vector<128x256xf32>
    %6 = arith.truncf %5 : vector<128x256xf32> to vector<128x256xbf16>
    %c0_4 = arith.constant 0 : index
    %c0_5 = arith.constant 0 : index
    %7 = vector.load %arg4[%c0_4, %c0_5] : memref<128x256xbf16, #tpu.memory_space<vmem>>, vector<128x256xbf16>
    tpu.vector_store %arg4[%c0_4, %c0_5], %6 {strides = array<i32>} : memref<128x256xbf16, #tpu.memory_space<vmem>>, vector<128x256xbf16>,
    %c0_6 = arith.constant 0 : index
    %c0_7 = arith.constant 0 : index
    %8 = vector.load %arg5[%c0_6, %c0_7] : memref<1x256xf32, #tpu.memory_space<vmem>>, vector<1x256xf32>
    %cst_8 = arith.constant dense<0.000000e+00> : vector<256xf32>
    %9 = vector.multi_reduction <add>, %5, %cst_8 [0] : vector<128x256xf32> to vector<256xf32>
    %10 = vector.shape_cast %9 : vector<256xf32> to vector<1x256xf32>
    %11 = arith.addf %8, %10 : vector<1x256xf32>
    %c0_9 = arith.constant 0 : index
    %c0_10 = arith.constant 0 : index
    %12 = vector.load %arg5[%c0_9, %c0_10] : memref<1x256xf32, #tpu.memory_space<vmem>>, vector<1x256xf32>
    tpu.vector_store %arg5[%c0_9, %c0_10], %11 {strides = array<i32>} : memref<1x256xf32, #tpu.memory_space<vmem>>, vector<1x256xf32>,
    %c0_11 = arith.constant 0 : index
    %c0_12 = arith.constant 0 : index
    %13 = vector.load %arg6[%c0_11, %c0_12] : memref<1x256xf32, #tpu.memory_space<vmem>>, vector<1x256xf32>
    %14 = arith.mulf %5, %5 : vector<128x256xf32>
    %cst_13 = arith.constant dense<0.000000e+00> : vector<256xf32>
    %15 = vector.multi_reduction <add>, %14, %cst_13 [0] : vector<128x256xf32> to vector<256xf32>
    %16 = vector.shape_cast %15 : vector<256xf32> to vector<1x256xf32>
    %17 = arith.addf %13, %16 : vector<1x256xf32>
    %c0_14 = arith.constant 0 : index
    %c0_15 = arith.constant 0 : index
    %18 = vector.load %arg6[%c0_14, %c0_15] : memref<1x256xf32, #tpu.memory_space<vmem>>, vector<1x256xf32>
    tpu.vector_store %arg6[%c0_14, %c0_15], %17 {strides = array<i32>} : memref<1x256xf32, #tpu.memory_space<vmem>>, vector<1x256xf32>,
    return
  }
  func.func @transform_0(%arg0: i32, %arg1: i32) -> (i32, i32) {
    %c3_i32 = arith.constant 3 : i32
    %0 = arith.muli %arg0, %c3_i32 : i32
    %1 = arith.addi %0, %arg1 : i32
    %c0_i32 = arith.constant 0 : i32
    %c0_i32_0 = arith.constant 0 : i32
    return %1, %c0_i32 : i32, i32
  }
  func.func @transform_1(%arg0: i32, %arg1: i32) -> (i32, i32) {
    %c0_i32 = arith.constant 0 : i32
    %c0_i32_0 = arith.constant 0 : i32
    %c0_i32_1 = arith.constant 0 : i32
    return %c0_i32, %c0_i32_0 : i32, i32
  }
  func.func @transform_2(%arg0: i32, %arg1: i32) -> (i32, i32) {
    %c3_i32 = arith.constant 3 : i32
    %0 = arith.muli %arg0, %c3_i32 : i32
    %1 = arith.addi %0, %arg1 : i32
    %c0_i32 = arith.constant 0 : i32
    %c0_i32_0 = arith.constant 0 : i32
    return %1, %c0_i32 : i32, i32
  }
  func.func @transform_3(%arg0: i32, %arg1: i32) -> (i32, i32) {
    %c0_i32 = arith.constant 0 : i32
    %c0_i32_0 = arith.constant 0 : i32
    return %c0_i32, %arg0 : i32, i32
  }
  func.func @transform_4(%arg0: i32, %arg1: i32) -> (i32, i32) {
    %c0_i32 = arith.constant 0 : i32
    %c0_i32_0 = arith.constant 0 : i32
    return %c0_i32, %arg0 : i32, i32
  }
}

module attributes {stable_mosaic.version = 11 : i64} {
  func.func @_bn_relu_lin_stats_kernel(%arg0: i32, %arg1: i32, %arg2: memref<128x256xbf16, #tpu.memory_space<vmem>>, %arg3: memref<1x256xf32, #tpu.memory_space<vmem>>, %arg4: memref<1x256xf32, #tpu.memory_space<vmem>>, %arg5: memref<256x256xbf16, #tpu.memory_space<vmem>>, %arg6: memref<128x256xbf16, #tpu.memory_space<vmem>>, %arg7: memref<1x256xf32, #tpu.memory_space<vmem>>, %arg8: memref<1x256xf32, #tpu.memory_space<vmem>>) attributes {dimension_semantics = [#tpu.dimension_semantics<parallel>, #tpu.dimension_semantics<arbitrary>], iteration_bounds = array<i64: 1, 3>, scalar_prefetch = 0 : i64, scratch_operands = 0 : i64, tpu.core_type = #tpu.core_type<tc>, window_params = [{transform_indices = @transform_0, window_bounds = array<i64: 128, 256>}, {pipeline_mode = #tpu.pipeline_mode<synchronous>, transform_indices = @transform_1, window_bounds = array<i64: 1, 256>}, {pipeline_mode = #tpu.pipeline_mode<synchronous>, transform_indices = @transform_2, window_bounds = array<i64: 1, 256>}, {pipeline_mode = #tpu.pipeline_mode<synchronous>, transform_indices = @transform_3, window_bounds = array<i64: 256, 256>}, {transform_indices = @transform_4, window_bounds = array<i64: 128, 256>}, {transform_indices = @transform_5, window_bounds = array<i64: 1, 256>}, {transform_indices = @transform_6, window_bounds = array<i64: 1, 256>}]} {
    %c0_i32 = arith.constant 0 : i32
    %0 = arith.cmpi eq, %arg1, %c0_i32 : i32
    %1 = arith.extui %0 : i1 to i32
    %c0_i32_0 = arith.constant 0 : i32
    %2 = arith.cmpi ne, %1, %c0_i32_0 : i32
    scf.if %2 {
      %cst_23 = arith.constant 0.000000e+00 : f32
      %34 = vector.broadcast %cst_23 : f32 to vector<1x256xf32>
      %c0_24 = arith.constant 0 : index
      %c0_25 = arith.constant 0 : index
      %35 = vector.load %arg7[%c0_24, %c0_25] : memref<1x256xf32, #tpu.memory_space<vmem>>, vector<1x256xf32>
      tpu.vector_store %arg7[%c0_24, %c0_25], %34 {strides = array<i32>} : memref<1x256xf32, #tpu.memory_space<vmem>>, vector<1x256xf32>,
      %cst_26 = arith.constant 0.000000e+00 : f32
      %36 = vector.broadcast %cst_26 : f32 to vector<1x256xf32>
      %c0_27 = arith.constant 0 : index
      %c0_28 = arith.constant 0 : index
      %37 = vector.load %arg8[%c0_27, %c0_28] : memref<1x256xf32, #tpu.memory_space<vmem>>, vector<1x256xf32>
      tpu.vector_store %arg8[%c0_27, %c0_28], %36 {strides = array<i32>} : memref<1x256xf32, #tpu.memory_space<vmem>>, vector<1x256xf32>,
    } else {
    }
    %c0 = arith.constant 0 : index
    %c0_1 = arith.constant 0 : index
    %3 = vector.load %arg2[%c0, %c0_1] : memref<128x256xbf16, #tpu.memory_space<vmem>>, vector<128x256xbf16>
    %4 = arith.extf %3 : vector<128x256xbf16> to vector<128x256xf32>
    %c0_2 = arith.constant 0 : index
    %c0_3 = arith.constant 0 : index
    %5 = vector.load %arg3[%c0_2, %c0_3] : memref<1x256xf32, #tpu.memory_space<vmem>>, vector<1x256xf32>
    %6 = vector.broadcast %5 : vector<1x256xf32> to vector<128x256xf32>
    %7 = arith.mulf %4, %6 : vector<128x256xf32>
    %c0_4 = arith.constant 0 : index
    %c0_5 = arith.constant 0 : index
    %8 = vector.load %arg4[%c0_4, %c0_5] : memref<1x256xf32, #tpu.memory_space<vmem>>, vector<1x256xf32>
    %9 = vector.broadcast %8 : vector<1x256xf32> to vector<128x256xf32>
    %10 = arith.addf %7, %9 : vector<128x256xf32>
    %cst = arith.constant 0.000000e+00 : f32
    %11 = vector.broadcast %cst : f32 to vector<128x256xf32>
    %12 = arith.maximumf %10, %11 : vector<128x256xf32>
    %13 = arith.truncf %12 : vector<128x256xf32> to vector<128x256xbf16>
    %c0_6 = arith.constant 0 : index
    %c0_7 = arith.constant 0 : index
    %14 = vector.load %arg5[%c0_6, %c0_7] : memref<256x256xbf16, #tpu.memory_space<vmem>>, vector<256x256xbf16>
    %cst_8 = arith.constant dense<0.000000e+00> : vector<128x256xf32>
    %15 = tpu.matmul %13, %14, %cst_8 {dimension_numbers = #tpu.dot_dimension_numbers<[1], [0], [0], [1], [0, 0, 1, 1], [], []>} : vector<128x256xbf16>, vector<256x256xbf16>, vector<128x256xf32> -> vector<128x256xf32>
    %16 = arith.truncf %15 : vector<128x256xf32> to vector<128x256xbf16>
    %c0_9 = arith.constant 0 : index
    %c0_10 = arith.constant 0 : index
    %17 = vector.load %arg6[%c0_9, %c0_10] : memref<128x256xbf16, #tpu.memory_space<vmem>>, vector<128x256xbf16>
    tpu.vector_store %arg6[%c0_9, %c0_10], %16 {strides = array<i32>} : memref<128x256xbf16, #tpu.memory_space<vmem>>, vector<128x256xbf16>,
    %c0_11 = arith.constant 0 : index
    %c0_12 = arith.constant 0 : index
    %18 = vector.load %arg7[%c0_11, %c0_12] : memref<1x256xf32, #tpu.memory_space<vmem>>, vector<1x256xf32>
    %cst_13 = arith.constant dense<0.000000e+00> : vector<256xf32>
    %19 = vector.multi_reduction <add>, %15, %cst_13 [0] : vector<128x256xf32> to vector<256xf32>
    %20 = vector.shape_cast %19 : vector<256xf32> to vector<1x256xf32>
    %21 = arith.addf %18, %20 : vector<1x256xf32>
    %c0_14 = arith.constant 0 : index
    %c0_15 = arith.constant 0 : index
    %22 = vector.load %arg7[%c0_14, %c0_15] : memref<1x256xf32, #tpu.memory_space<vmem>>, vector<1x256xf32>
    tpu.vector_store %arg7[%c0_14, %c0_15], %21 {strides = array<i32>} : memref<1x256xf32, #tpu.memory_space<vmem>>, vector<1x256xf32>,
    %c0_16 = arith.constant 0 : index
    %c0_17 = arith.constant 0 : index
    %23 = vector.load %arg8[%c0_16, %c0_17] : memref<1x256xf32, #tpu.memory_space<vmem>>, vector<1x256xf32>
    %24 = arith.mulf %15, %15 : vector<128x256xf32>
    %cst_18 = arith.constant dense<0.000000e+00> : vector<256xf32>
    %25 = vector.multi_reduction <add>, %24, %cst_18 [0] : vector<128x256xf32> to vector<256xf32>
    %26 = vector.shape_cast %25 : vector<256xf32> to vector<1x256xf32>
    %27 = arith.addf %23, %26 : vector<1x256xf32>
    %c0_19 = arith.constant 0 : index
    %c0_20 = arith.constant 0 : index
    %28 = vector.load %arg8[%c0_19, %c0_20] : memref<1x256xf32, #tpu.memory_space<vmem>>, vector<1x256xf32>
    tpu.vector_store %arg8[%c0_19, %c0_20], %27 {strides = array<i32>} : memref<1x256xf32, #tpu.memory_space<vmem>>, vector<1x256xf32>,
    %c0_i32_21 = arith.constant 0 : i32
    %29 = arith.cmpi eq, %arg0, %c0_i32_21 : i32
    %c2_i32 = arith.constant 2 : i32
    %30 = arith.cmpi eq, %arg1, %c2_i32 : i32
    %31 = arith.andi %29, %30 : i1
    %32 = arith.extui %31 : i1 to i32
    %c0_i32_22 = arith.constant 0 : i32
    %33 = arith.cmpi ne, %32, %c0_i32_22 : i32
    scf.if %33 {
      %34 = vector.extract_strided_slice %15 {offsets = [44, 0], sizes = [84, 256], strides = [1, 1]} : vector<128x256xf32> to vector<84x256xf32>
      %c0_23 = arith.constant 0 : index
      %c0_24 = arith.constant 0 : index
      %35 = vector.load %arg7[%c0_23, %c0_24] : memref<1x256xf32, #tpu.memory_space<vmem>>, vector<1x256xf32>
      %cst_25 = arith.constant dense<0.000000e+00> : vector<256xf32>
      %36 = vector.multi_reduction <add>, %34, %cst_25 [0] : vector<84x256xf32> to vector<256xf32>
      %37 = vector.shape_cast %36 : vector<256xf32> to vector<1x256xf32>
      %38 = arith.subf %35, %37 : vector<1x256xf32>
      %c0_26 = arith.constant 0 : index
      %c0_27 = arith.constant 0 : index
      %39 = vector.load %arg7[%c0_26, %c0_27] : memref<1x256xf32, #tpu.memory_space<vmem>>, vector<1x256xf32>
      tpu.vector_store %arg7[%c0_26, %c0_27], %38 {strides = array<i32>} : memref<1x256xf32, #tpu.memory_space<vmem>>, vector<1x256xf32>,
      %c0_28 = arith.constant 0 : index
      %c0_29 = arith.constant 0 : index
      %40 = vector.load %arg8[%c0_28, %c0_29] : memref<1x256xf32, #tpu.memory_space<vmem>>, vector<1x256xf32>
      %41 = arith.mulf %34, %34 : vector<84x256xf32>
      %cst_30 = arith.constant dense<0.000000e+00> : vector<256xf32>
      %42 = vector.multi_reduction <add>, %41, %cst_30 [0] : vector<84x256xf32> to vector<256xf32>
      %43 = vector.shape_cast %42 : vector<256xf32> to vector<1x256xf32>
      %44 = arith.subf %40, %43 : vector<1x256xf32>
      %c0_31 = arith.constant 0 : index
      %c0_32 = arith.constant 0 : index
      %45 = vector.load %arg8[%c0_31, %c0_32] : memref<1x256xf32, #tpu.memory_space<vmem>>, vector<1x256xf32>
      tpu.vector_store %arg8[%c0_31, %c0_32], %44 {strides = array<i32>} : memref<1x256xf32, #tpu.memory_space<vmem>>, vector<1x256xf32>,
    } else {
    }
    return
  }
  func.func @transform_0(%arg0: i32, %arg1: i32) -> (i32, i32) {
    %c3_i32 = arith.constant 3 : i32
    %0 = arith.muli %arg0, %c3_i32 : i32
    %1 = arith.addi %0, %arg1 : i32
    %c0_i32 = arith.constant 0 : i32
    %c0_i32_0 = arith.constant 0 : i32
    return %1, %c0_i32 : i32, i32
  }
  func.func @transform_1(%arg0: i32, %arg1: i32) -> (i32, i32) {
    %c0_i32 = arith.constant 0 : i32
    %c0_i32_0 = arith.constant 0 : i32
    %c0_i32_1 = arith.constant 0 : i32
    return %c0_i32, %c0_i32_0 : i32, i32
  }
  func.func @transform_2(%arg0: i32, %arg1: i32) -> (i32, i32) {
    %c0_i32 = arith.constant 0 : i32
    %c0_i32_0 = arith.constant 0 : i32
    %c0_i32_1 = arith.constant 0 : i32
    return %c0_i32, %c0_i32_0 : i32, i32
  }
  func.func @transform_3(%arg0: i32, %arg1: i32) -> (i32, i32) {
    %c0_i32 = arith.constant 0 : i32
    %c0_i32_0 = arith.constant 0 : i32
    %c0_i32_1 = arith.constant 0 : i32
    return %c0_i32, %c0_i32_0 : i32, i32
  }
  func.func @transform_4(%arg0: i32, %arg1: i32) -> (i32, i32) {
    %c3_i32 = arith.constant 3 : i32
    %0 = arith.muli %arg0, %c3_i32 : i32
    %1 = arith.addi %0, %arg1 : i32
    %c0_i32 = arith.constant 0 : i32
    %c0_i32_0 = arith.constant 0 : i32
    return %1, %c0_i32 : i32, i32
  }
  func.func @transform_5(%arg0: i32, %arg1: i32) -> (i32, i32) {
    %c0_i32 = arith.constant 0 : i32
    %c0_i32_0 = arith.constant 0 : i32
    return %c0_i32, %arg0 : i32, i32
  }
  func.func @transform_6(%arg0: i32, %arg1: i32) -> (i32, i32) {
    %c0_i32 = arith.constant 0 : i32
    %c0_i32_0 = arith.constant 0 : i32
    return %c0_i32, %arg0 : i32, i32
  }
}

module attributes {stable_mosaic.version = 11 : i64} {
  func.func @_bn_relu_lin_bias_kernel(%arg0: i32, %arg1: i32, %arg2: memref<128x256xbf16, #tpu.memory_space<vmem>>, %arg3: memref<1x256xf32, #tpu.memory_space<vmem>>, %arg4: memref<1x256xf32, #tpu.memory_space<vmem>>, %arg5: memref<256x128xbf16, #tpu.memory_space<vmem>>, %arg6: memref<1x128xf32, #tpu.memory_space<vmem>>, %arg7: memref<128x128xf32, #tpu.memory_space<vmem>>) attributes {dimension_semantics = [#tpu.dimension_semantics<parallel>, #tpu.dimension_semantics<parallel>], iteration_bounds = array<i64: 1, 3>, scalar_prefetch = 0 : i64, scratch_operands = 0 : i64, tpu.core_type = #tpu.core_type<tc>, window_params = [{transform_indices = @transform_0, window_bounds = array<i64: 128, 256>}, {pipeline_mode = #tpu.pipeline_mode<synchronous>, transform_indices = @transform_1, window_bounds = array<i64: 1, 256>}, {pipeline_mode = #tpu.pipeline_mode<synchronous>, transform_indices = @transform_2, window_bounds = array<i64: 1, 256>}, {pipeline_mode = #tpu.pipeline_mode<synchronous>, transform_indices = @transform_3, window_bounds = array<i64: 256, 128>}, {pipeline_mode = #tpu.pipeline_mode<synchronous>, transform_indices = @transform_4, window_bounds = array<i64: 1, 128>}, {transform_indices = @transform_5, window_bounds = array<i64: 128, 128>}]} {
    %c0 = arith.constant 0 : index
    %c0_0 = arith.constant 0 : index
    %0 = vector.load %arg2[%c0, %c0_0] : memref<128x256xbf16, #tpu.memory_space<vmem>>, vector<128x256xbf16>
    %1 = arith.extf %0 : vector<128x256xbf16> to vector<128x256xf32>
    %c0_1 = arith.constant 0 : index
    %c0_2 = arith.constant 0 : index
    %2 = vector.load %arg3[%c0_1, %c0_2] : memref<1x256xf32, #tpu.memory_space<vmem>>, vector<1x256xf32>
    %3 = vector.broadcast %2 : vector<1x256xf32> to vector<128x256xf32>
    %4 = arith.mulf %1, %3 : vector<128x256xf32>
    %c0_3 = arith.constant 0 : index
    %c0_4 = arith.constant 0 : index
    %5 = vector.load %arg4[%c0_3, %c0_4] : memref<1x256xf32, #tpu.memory_space<vmem>>, vector<1x256xf32>
    %6 = vector.broadcast %5 : vector<1x256xf32> to vector<128x256xf32>
    %7 = arith.addf %4, %6 : vector<128x256xf32>
    %cst = arith.constant 0.000000e+00 : f32
    %8 = vector.broadcast %cst : f32 to vector<128x256xf32>
    %9 = arith.maximumf %7, %8 : vector<128x256xf32>
    %10 = arith.truncf %9 : vector<128x256xf32> to vector<128x256xbf16>
    %c0_5 = arith.constant 0 : index
    %c0_6 = arith.constant 0 : index
    %11 = vector.load %arg5[%c0_5, %c0_6] : memref<256x128xbf16, #tpu.memory_space<vmem>>, vector<256x128xbf16>
    %cst_7 = arith.constant dense<0.000000e+00> : vector<128x128xf32>
    %12 = tpu.matmul %10, %11, %cst_7 {dimension_numbers = #tpu.dot_dimension_numbers<[1], [0], [0], [1], [0, 0, 1, 1], [], []>} : vector<128x256xbf16>, vector<256x128xbf16>, vector<128x128xf32> -> vector<128x128xf32>
    %c0_8 = arith.constant 0 : index
    %c0_9 = arith.constant 0 : index
    %13 = vector.load %arg6[%c0_8, %c0_9] : memref<1x128xf32, #tpu.memory_space<vmem>>, vector<1x128xf32>
    %14 = vector.broadcast %13 : vector<1x128xf32> to vector<128x128xf32>
    %15 = arith.addf %12, %14 : vector<128x128xf32>
    %c0_10 = arith.constant 0 : index
    %c0_11 = arith.constant 0 : index
    %16 = vector.load %arg7[%c0_10, %c0_11] : memref<128x128xf32, #tpu.memory_space<vmem>>, vector<128x128xf32>
    tpu.vector_store %arg7[%c0_10, %c0_11], %15 {strides = array<i32>} : memref<128x128xf32, #tpu.memory_space<vmem>>, vector<128x128xf32>,
    return
  }
  func.func @transform_0(%arg0: i32, %arg1: i32) -> (i32, i32) {
    %c3_i32 = arith.constant 3 : i32
    %0 = arith.muli %arg0, %c3_i32 : i32
    %1 = arith.addi %0, %arg1 : i32
    %c0_i32 = arith.constant 0 : i32
    %c0_i32_0 = arith.constant 0 : i32
    return %1, %c0_i32 : i32, i32
  }
  func.func @transform_1(%arg0: i32, %arg1: i32) -> (i32, i32) {
    %c0_i32 = arith.constant 0 : i32
    %c0_i32_0 = arith.constant 0 : i32
    %c0_i32_1 = arith.constant 0 : i32
    return %c0_i32, %c0_i32_0 : i32, i32
  }
  func.func @transform_2(%arg0: i32, %arg1: i32) -> (i32, i32) {
    %c0_i32 = arith.constant 0 : i32
    %c0_i32_0 = arith.constant 0 : i32
    %c0_i32_1 = arith.constant 0 : i32
    return %c0_i32, %c0_i32_0 : i32, i32
  }
  func.func @transform_3(%arg0: i32, %arg1: i32) -> (i32, i32) {
    %c0_i32 = arith.constant 0 : i32
    %c0_i32_0 = arith.constant 0 : i32
    %c0_i32_1 = arith.constant 0 : i32
    return %c0_i32, %c0_i32_0 : i32, i32
  }
  func.func @transform_4(%arg0: i32, %arg1: i32) -> (i32, i32) {
    %c0_i32 = arith.constant 0 : i32
    %c0_i32_0 = arith.constant 0 : i32
    %c0_i32_1 = arith.constant 0 : i32
    return %c0_i32, %c0_i32_0 : i32, i32
  }
  func.func @transform_5(%arg0: i32, %arg1: i32) -> (i32, i32) {
    %c3_i32 = arith.constant 3 : i32
    %0 = arith.muli %arg0, %c3_i32 : i32
    %1 = arith.addi %0, %arg1 : i32
    %c0_i32 = arith.constant 0 : i32
    %c0_i32_0 = arith.constant 0 : i32
    return %1, %c0_i32 : i32, i32
  }
}

</mosaic_0001>

<bundles_post_ra>
// kernel: b2d_2d_forward.3
= control target key start
LH: loop header
LB: loop body
LE: loop exit
PB: predicated region body
PF: predicated region fallthrough
CT: control target
= control target key end

     0   :  { %s1386_s15 = smov 0   ;;  %s1388_s16 = smov 0   ;;  %s1741_s0 = inlined_call_operand.vmem [shape: bf16[384,256], index: 0, kind: input, shape index: {}]   ;;  %s1742_s1 = inlined_call_operand.vmem [shape: bf16[256,256], index: 1, kind: input, shape index: {}]   ;;  %s1743_s2 = inlined_call_operand.vmem [shape: bf16[384,256], index: 2, kind: output, shape index: {0}]   ;;  %s1744_s3 = inlined_call_operand.vmem [shape: f32[1,256], index: 3, kind: output, shape index: {1}]   ;;  %s1745_s4 = inlined_call_operand.vmem [shape: f32[1,256], index: 4, kind: output, shape index: {2}]  }
   0x1   :  { %s1390_s17 = smov 0  }
   0x2 LB: > { %s24_s18 = sadd.s32 1, %s1354_s16  ;;  %p1055_p0 = scmp.ge.s32.totalorder %s1358_s17, 1  ;;  %s1358_s17 = sphi %s1390_s17, %s15_s17   ;;  %s1354_s16 = sphi %s1388_s16, %s1747_s16   ;;  %s1350_s15 = sphi %s1386_s15, %s1746_s15  }
   0x3   : > { %p25_p1 = scmp.ge.s32.totalorder %s24_s18, 3  ;;  %p193_p2 = scmp.lt.s32.totalorder %s1358_s17, 4 }
   0x5   : > { %s1749_s18 = smov (%p25_p1, %s24_s18), 0  ;;  %p194_p3 = pnand %p1055_p0, %p193_p2 }
   0x6   : > { %s1056_s19 = sshll.u32 (!%p194_p3), %s1350_s15, 4  ;;  %p1062_p5 = scmp.ne.s32.totalorder (!%p194_p3), %s1350_s15, 0 }
   0x7   : > { %197 = sbr.rel (%p194_p3) target bundleno = 334 (0x14e), region = 28  ;;  %p236_p4 = scmp.lt.s32.totalorder (!%p194_p3), %s1056_s19, 47 }
   0xc   : > { %s1751_s19 = smov (!%p236_p4, %s1056_s19), 47  ;;  %268 = sbr.rel (%p1062_p5) target bundleno = 22 (0x16), region = 32 }
   0xd   : > { %s1261_s20 = sshll.u32 %s1751_s19, 3 }
   0xe   : > { %s1407_s23 = scalar_lea.vmem %s1741_s0, %s1261_s20  ;;  %s1412_s26 = scalar_lea.vmem %s1743_s2, %s1261_s20 }
  0x11   : > { %v269_v0 = vlaneseq  ;;  %v1360_v1 = vmov 0.0  }
  0x13   : > { %vm271_vm0 = vcmp.lt.s32.totalorder %v269_v0, 256 }
  0x14   : > { %273 = vst.msk [vmem:[%s1744_s3] sm:$0x3] %vm271_vm0, %v1360_v1 }
  0x15   : > { %274 = vst.msk [vmem:[%s1745_s4] sm:$0x3] %vm271_vm0, %v1360_v1 }
  0x16 PF: > { %v1185_v2 = vld [vmem:[%s1742_s1 + $0x70] sm:$0xf]  ;;  %v1294_v3 = vld [vmem:[%s1742_s1 + $0x74] sm:$0xf0]  ;;  %v1293_v7 = vld [vmem:[%s1742_s1 + $0x74] sm:$0xf] }
  0x17   : > { %v1249_v4 = vld [vmem:[%s1742_s1 + $0xf0] sm:$0xf]  ;;  %v1186_v5 = vor.u32 %v1294_v3, %v1185_v2  ;;  %v1310_v6 = vld [vmem:[%s1742_s1 + $0xf4] sm:$0xf0]  ;;  %v1187_v8 = vld [vmem:[%s1742_s1 + $0x78] sm:$0xf0] }
  0x18   : > { %v1250_v9 = vor.u32 %v1310_v6, %v1249_v4  ;;  %v1190_v10 = vor.u32 %v1293_v7, %v1187_v8  ;;  %v1309_v11 = vld [vmem:[%s1742_s1 + $0xf4] sm:$0xf]  ;;  %v1251_v12 = vld [vmem:[%s1742_s1 + $0xf8] sm:$0xf0]  ;;  %v1177_v13 = vld [vmem:[%s1742_s1 + $0x60] sm:$0xf] }
  0x19   : > { %563 = vmatpush.bf16.msra.mxu0 %v1186_v5  ;;  %v1254_v14 = vor.u32 %v1309_v11, %v1251_v12  ;;  %v1292_v15 = vld [vmem:[%s1742_s1 + $0x64] sm:$0xf0]  ;;  %v1241_v16 = vld [vmem:[%s1742_s1 + $0xe0] sm:$0xf]  ;;  %v1291_v20 = vld [vmem:[%s1742_s1 + $0x64] sm:$0xf] }
  0x1a   : > { %v1308_v17 = vld [vmem:[%s1742_s1 + $0xe4] sm:$0xf0]  ;;  %612 = vmatpush.bf16.msra.mxu1 %v1250_v9  ;;  %661 = vmatpush.bf16.msra.mxu2 %v1190_v10  ;;  %v1178_v18 = vor.u32 %v1292_v15, %v1177_v13  ;;  %v1179_v21 = vld [vmem:[%s1742_s1 + $0x68] sm:$0xf0]  ;;  %v1307_v22 = vld [vmem:[%s1742_s1 + $0xe4] sm:$0xf] }
  0x1b   : > { %v1242_v19 = vor.u32 %v1308_v17, %v1241_v16  ;;  %710 = vmatpush.bf16.msra.mxu3 %v1254_v14  ;;  %v1182_v23 = vor.u32 %v1291_v20, %v1179_v21  ;;  %v1243_v24 = vld [vmem:[%s1742_s1 + $0xe8] sm:$0xf0]  ;;  %v1169_v25 = vld [vmem:[%s1742_s1 + $0x50] sm:$0xf]  ;;  %v1290_v26 = vld [vmem:[%s1742_s1 + $0x54] sm:$0xf0] }
  0x1c   : > { %v1246_v27 = vor.u32 %v1307_v22, %v1243_v24  ;;  %v1233_v28 = vld [vmem:[%s1742_s1 + $0xd0] sm:$0xf]  ;;  %v1306_v29 = vld [vmem:[%s1742_s1 + $0xd4] sm:$0xf0]  ;;  %v1289_v30 = vld [vmem:[%s1742_s1 + $0x54] sm:$0xf]  ;;  %v1170_v31 = vor.u32 %v1290_v26, %v1169_v25 }
  0x1d   : > { %564 = vmatpush.bf16.msra.mxu0 %v1178_v18  ;;  %v1171_v32 = vld [vmem:[%s1742_s1 + $0x58] sm:$0xf0]  ;;  %v1305_v33 = vld [vmem:[%s1742_s1 + $0xd4] sm:$0xf]  ;;  %v1234_v35 = vor.u32 %v1306_v29, %v1233_v28  ;;  %v1161_v37 = vld [vmem:[%s1742_s1 + $0x40] sm:$0xf] }
  0x1e   : > { %v1235_v34 = vld [vmem:[%s1742_s1 + $0xd8] sm:$0xf0]  ;;  %613 = vmatpush.bf16.msra.mxu1 %v1242_v19  ;;  %662 = vmatpush.bf16.msra.mxu2 %v1182_v23  ;;  %v1174_v36 = vor.u32 %v1289_v30, %v1171_v32  ;;  %v1288_v38 = vld [vmem:[%s1742_s1 + $0x44] sm:$0xf0]  ;;  %v1225_v39 = vld [vmem:[%s1742_s1 + $0xc0] sm:$0xf] }
  0x1f   : > { %711 = vmatpush.bf16.msra.mxu3 %v1246_v27  ;;  %v1238_v40 = vor.u32 %v1305_v33, %v1235_v34  ;;  %v1304_v41 = vld [vmem:[%s1742_s1 + $0xc4] sm:$0xf0]  ;;  %v1287_v42 = vld [vmem:[%s1742_s1 + $0x44] sm:$0xf]  ;;  %v1163_v43 = vld [vmem:[%s1742_s1 + $0x48] sm:$0xf0]  ;;  %v1162_v46 = vor.u32 %v1288_v38, %v1161_v37 }
  0x20   : > { %v1303_v44 = vld [vmem:[%s1742_s1 + $0xc4] sm:$0xf]  ;;  %v1227_v45 = vld [vmem:[%s1742_s1 + $0xc8] sm:$0xf0]  ;;  %v1226_v47 = vor.u32 %v1304_v41, %v1225_v39  ;;  %v1166_v48 = vor.u32 %v1287_v42, %v1163_v43  ;;  %v1153_v49 = vld [vmem:[%s1742_s1 + $0x30] sm:$0xf] }
  0x21   : > { %565 = vmatpush.bf16.msra.mxu0 %v1170_v31  ;;  %v1286_v50 = vld [vmem:[%s1742_s1 + $0x34] sm:$0xf0]  ;;  %v1217_v51 = vld [vmem:[%s1742_s1 + $0xb0] sm:$0xf]  ;;  %v1230_v52 = vor.u32 %v1303_v44, %v1227_v45  ;;  %v1285_v54 = vld [vmem:[%s1742_s1 + $0x34] sm:$0xf] }
  0x22   : > { %614 = vmatpush.bf16.msra.mxu1 %v1234_v35  ;;  %663 = vmatpush.bf16.msra.mxu2 %v1174_v36  ;;  %v1302_v53 = vld [vmem:[%s1742_s1 + $0xb4] sm:$0xf0]  ;;  %v1155_v55 = vld [vmem:[%s1742_s1 + $0x38] sm:$0xf0]  ;;  %v1301_v56 = vld [vmem:[%s1742_s1 + $0xb4] sm:$0xf]  ;;  %v1154_v58 = vor.u32 %v1286_v50, %v1153_v49 }
  0x23   : > { %712 = vmatpush.bf16.msra.mxu3 %v1238_v40  ;;  %v1219_v57 = vld [vmem:[%s1742_s1 + $0xb8] sm:$0xf0]  ;;  %v1218_v59 = vor.u32 %v1302_v53, %v1217_v51  ;;  %v1158_v60 = vor.u32 %v1285_v54, %v1155_v55  ;;  %v1145_v61 = vld [vmem:[%s1742_s1 + $0x20] sm:$0xf]  ;;  %v1284_v62 = vld [vmem:[%s1742_s1 + $0x24] sm:$0xf0] }
  0x24   : > { %v1209_v63 = vld [vmem:[%s1742_s1 + $0xa0] sm:$0xf]  ;;  %v1222_v0 = vor.u32 %v1301_v56, %v1219_v57  ;;  %v1300_v1 = vld [vmem:[%s1742_s1 + $0xa4] sm:$0xf0]  ;;  %v1283_v2 = vld [vmem:[%s1742_s1 + $0x24] sm:$0xf]  ;;  %v1146_v6 = vor.u32 %v1284_v62, %v1145_v61 }
  0x25   : > { %566 = vmatpush.bf16.msra.mxu0 %v1162_v46  ;;  %v1147_v3 = vld [vmem:[%s1742_s1 + $0x28] sm:$0xf0]  ;;  %v1299_v4 = vld [vmem:[%s1742_s1 + $0xa4] sm:$0xf]  ;;  %v1210_v7 = vor.u32 %v1300_v1, %v1209_v63  ;;  %v1137_v9 = vld [vmem:[%s1742_s1 + $0x10] sm:$0xf] }
  0x26   : > { %615 = vmatpush.bf16.msra.mxu1 %v1226_v47  ;;  %664 = vmatpush.bf16.msra.mxu2 %v1166_v48  ;;  %v1211_v5 = vld [vmem:[%s1742_s1 + $0xa8] sm:$0xf0]  ;;  %v1150_v8 = vor.u32 %v1283_v2, %v1147_v3  ;;  %v1282_v10 = vld [vmem:[%s1742_s1 + $0x14] sm:$0xf0]  ;;  %v1201_v11 = vld [vmem:[%s1742_s1 + $0x90] sm:$0xf] }
  0x27   : > { %713 = vmatpush.bf16.msra.mxu3 %v1230_v52  ;;  %v1214_v12 = vor.u32 %v1299_v4, %v1211_v5  ;;  %v1298_v13 = vld [vmem:[%s1742_s1 + $0x94] sm:$0xf0]  ;;  %v1281_v14 = vld [vmem:[%s1742_s1 + $0x14] sm:$0xf]  ;;  %v1139_v15 = vld [vmem:[%s1742_s1 + $0x18] sm:$0xf0]  ;;  %v1138_v18 = vor.u32 %v1282_v10, %v1137_v9 }
  0x28   : > { %v1297_v16 = vld [vmem:[%s1742_s1 + $0x94] sm:$0xf]  ;;  %v1203_v17 = vld [vmem:[%s1742_s1 + $0x98] sm:$0xf0]  ;;  %v1202_v19 = vor.u32 %v1298_v13, %v1201_v11  ;;  %v1142_v20 = vor.u32 %v1281_v14, %v1139_v15  ;;  %v1129_v21 = vld [vmem:[%s1742_s1] sm:$0xf] }
  0x29   : > { %567 = vmatpush.bf16.msra.mxu0 %v1154_v58  ;;  %v1280_v22 = vld [vmem:[%s1742_s1 + $0x4] sm:$0xf0]  ;;  %v1193_v23 = vld [vmem:[%s1742_s1 + $0x80] sm:$0xf]  ;;  %v1206_v24 = vor.u32 %v1297_v16, %v1203_v17  ;;  %v1279_v26 = vld [vmem:[%s1742_s1 + $0x4] sm:$0xf] }
  0x2a   : > { %616 = vmatpush.bf16.msra.mxu1 %v1218_v59  ;;  %665 = vmatpush.bf16.msra.mxu2 %v1158_v60  ;;  %v1296_v25 = vld [vmem:[%s1742_s1 + $0x84] sm:$0xf0]  ;;  %v1131_v27 = vld [vmem:[%s1742_s1 + $0x8] sm:$0xf0]  ;;  %v1295_v28 = vld [vmem:[%s1742_s1 + $0x84] sm:$0xf]  ;;  %v1130_v30 = vor.u32 %v1280_v22, %v1129_v21 }
  0x2b   : > { %714 = vmatpush.bf16.msra.mxu3 %v1222_v0  ;;  %v1195_v29 = vld [vmem:[%s1742_s1 + $0x88] sm:$0xf0]  ;;  %v1065_v31 = vld [vmem:[%s1407_s23] sm:$0xf]  ;;  %v1264_v32 = vld [vmem:[%s1407_s23 + $0x4] sm:$0xf0]  ;;  %v1194_v33 = vor.u32 %v1296_v25, %v1193_v23  ;;  %v1134_v34 = vor.u32 %v1279_v26, %v1131_v27 }
  0x2c   : > { %v1263_v35 = vld [vmem:[%s1407_s23 + $0x4] sm:$0xf]  ;;  %v1067_v36 = vld [vmem:[%s1407_s23 + $0x8] sm:$0xf0]  ;;  %v1198_v37 = vor.u32 %v1295_v28, %v1195_v29  ;;  %v1066_v38 = vor.u32 %v1264_v32, %v1065_v31  ;;  %v1073_v40 = vld [vmem:[%s1407_s23 + $0x10] sm:$0xf] }
  0x2d   : > { %568 = vmatpush.bf16.msra.mxu0 %v1146_v6  ;;  %v1070_v39 = vor.u32 %v1263_v35, %v1067_v36  ;;  %v1266_v41 = vld [vmem:[%s1407_s23 + $0x14] sm:$0xf0]  ;;  %v1265_v42 = vld [vmem:[%s1407_s23 + $0x14] sm:$0xf]  ;;  %v1075_v43 = vld [vmem:[%s1407_s23 + $0x18] sm:$0xf0] }
  0x2e   : > { %617 = vmatpush.bf16.msra.mxu1 %v1210_v7  ;;  %666 = vmatpush.bf16.msra.mxu2 %v1150_v8  ;;  %v1074_v44 = vor.u32 %v1266_v41, %v1073_v40  ;;  %v1078_v45 = vor.u32 %v1265_v42, %v1075_v43  ;;  %v1081_v46 = vld [vmem:[%s1407_s23 + $0x20] sm:$0xf]  ;;  %v1268_v47 = vld [vmem:[%s1407_s23 + $0x24] sm:$0xf0]  ;;  %v1267_v48 = vld [vmem:[%s1407_s23 + $0x24] sm:$0xf] }
  0x2f   : > { %715 = vmatpush.bf16.msra.mxu3 %v1214_v12  ;;  %v1083_v49 = vld [vmem:[%s1407_s23 + $0x28] sm:$0xf0]  ;;  %v1082_v50 = vor.u32 %v1268_v47, %v1081_v46  ;;  %v1089_v52 = vld [vmem:[%s1407_s23 + $0x30] sm:$0xf]  ;;  %v1270_v53 = vld [vmem:[%s1407_s23 + $0x34] sm:$0xf0] }
  0x30   : > { %v1086_v51 = vor.u32 %v1267_v48, %v1083_v49  ;;  %v1269_v54 = vld [vmem:[%s1407_s23 + $0x34] sm:$0xf]  ;;  %v1091_v55 = vld [vmem:[%s1407_s23 + $0x38] sm:$0xf0]  ;;  %v1090_v56 = vor.u32 %v1270_v53, %v1089_v52  ;;  %v1097_v58 = vld [vmem:[%s1407_s23 + $0x40] sm:$0xf] }
  0x31   : > { %569 = vmatpush.bf16.msra.mxu0 %v1138_v18  ;;  %v1094_v57 = vor.u32 %v1269_v54, %v1091_v55  ;;  %v1272_v59 = vld [vmem:[%s1407_s23 + $0x44] sm:$0xf0]  ;;  %v1271_v60 = vld [vmem:[%s1407_s23 + $0x44] sm:$0xf]  ;;  %v1099_v61 = vld [vmem:[%s1407_s23 + $0x48] sm:$0xf0] }
  0x32   : > { %618 = vmatpush.bf16.msra.mxu1 %v1202_v19  ;;  %667 = vmatpush.bf16.msra.mxu2 %v1142_v20  ;;  %v1098_v62 = vor.u32 %v1272_v59, %v1097_v58  ;;  %v1102_v63 = vor.u32 %v1271_v60, %v1099_v61  ;;  %v1105_v0 = vld [vmem:[%s1407_s23 + $0x50] sm:$0xf]  ;;  %v1274_v1 = vld [vmem:[%s1407_s23 + $0x54] sm:$0xf0]  ;;  %v1273_v2 = vld [vmem:[%s1407_s23 + $0x54] sm:$0xf] }
  0x33   : > { %716 = vmatpush.bf16.msra.mxu3 %v1206_v24  ;;  %v1107_v3 = vld [vmem:[%s1407_s23 + $0x58] sm:$0xf0]  ;;  %v1106_v4 = vor.u32 %v1274_v1, %v1105_v0  ;;  %v1113_v6 = vld [vmem:[%s1407_s23 + $0x60] sm:$0xf]  ;;  %v1276_v7 = vld [vmem:[%s1407_s23 + $0x64] sm:$0xf0] }
  0x34   : > { %v1110_v5 = vor.u32 %v1273_v2, %v1107_v3  ;;  %v1275_v8 = vld [vmem:[%s1407_s23 + $0x64] sm:$0xf]  ;;  %v1115_v9 = vld [vmem:[%s1407_s23 + $0x68] sm:$0xf0]  ;;  %v1114_v10 = vor.u32 %v1276_v7, %v1113_v6  ;;  %v1121_v12 = vld [vmem:[%s1407_s23 + $0x70] sm:$0xf] }
  0x35   : > { %570 = vmatpush.bf16.msra.mxu0 %v1130_v30  ;;  %v1118_v11 = vor.u32 %v1275_v8, %v1115_v9  ;;  %v1278_v13 = vld [vmem:[%s1407_s23 + $0x74] sm:$0xf0]  ;;  %v1277_v14 = vld [vmem:[%s1407_s23 + $0x74] sm:$0xf]  ;;  %v1123_v15 = vld [vmem:[%s1407_s23 + $0x78] sm:$0xf0] }
  0x36   : > { %619 = vmatpush.bf16.msra.mxu1 %v1194_v33  ;;  %668 = vmatpush.bf16.msra.mxu2 %v1134_v34  ;;  %v1122_v16 = vor.u32 %v1278_v13, %v1121_v12  ;;  %v1126_v17 = vor.u32 %v1277_v14, %v1123_v15  ;;  %vm837_vm1 = vcmask 1040384  }
  0x37   : > { %717 = vmatpush.bf16.msra.mxu3 %v1198_v37 }
  0x38   : > { %571 = vmatmul.bf16.vlgmr.msra.gmra.mxu0 %v1066_v38 }
  0x39   : > { %620 = vmatmul.bf16.vlgmr.msra.gmra.mxu1 %v1070_v39  ;;  %669 = vmatmul.bf16.vlgmr.msra.gmra.mxu2 %v1066_v38 }
  0x3a   : > { %718 = vmatmul.bf16.vlgmr.msra.gmra.mxu3 %v1070_v39 }
  0x48   : > { %576 = vmatmul.bf16.gmra.mxu0 %v1074_v44 }
  0x49   : > { %625 = vmatmul.bf16.gmra.mxu1 %v1078_v45  ;;  %674 = vmatmul.bf16.gmra.mxu2 %v1074_v44 }
  0x4a   : > { %723 = vmatmul.bf16.gmra.mxu3 %v1078_v45 }
  0x58   : > { %581 = vmatmul.bf16.gmra.mxu0 %v1082_v50 }
  0x59   : > { %630 = vmatmul.bf16.gmra.mxu1 %v1086_v51  ;;  %679 = vmatmul.bf16.gmra.mxu2 %v1082_v50 }
  0x5a   : > { %728 = vmatmul.bf16.gmra.mxu3 %v1086_v51 }
  0x68   : > { %586 = vmatmul.bf16.gmra.mxu0 %v1090_v56 }
  0x69   : > { %635 = vmatmul.bf16.gmra.mxu1 %v1094_v57  ;;  %684 = vmatmul.bf16.gmra.mxu2 %v1090_v56 }
  0x6a   : > { %733 = vmatmul.bf16.gmra.mxu3 %v1094_v57 }
  0x78   : > { %591 = vmatmul.bf16.gmra.mxu0 %v1098_v62 }
  0x79   : > { %640 = vmatmul.bf16.gmra.mxu1 %v1102_v63  ;;  %689 = vmatmul.bf16.gmra.mxu2 %v1098_v62 }
  0x7a   : > { %738 = vmatmul.bf16.gmra.mxu3 %v1102_v63 }
  0x88   : > { %596 = vmatmul.bf16.gmra.mxu0 %v1106_v4 }
  0x89   : > { %645 = vmatmul.bf16.gmra.mxu1 %v1110_v5  ;;  %694 = vmatmul.bf16.gmra.mxu2 %v1106_v4 }
  0x8a   : > { %743 = vmatmul.bf16.gmra.mxu3 %v1110_v5 }
  0x98   : > { %601 = vmatmul.bf16.gmra.mxu0 %v1114_v10 }
  0x99   : > { %650 = vmatmul.bf16.gmra.mxu1 %v1118_v11  ;;  %699 = vmatmul.bf16.gmra.mxu2 %v1114_v10 }
  0x9a   : > { %748 = vmatmul.bf16.gmra.mxu3 %v1118_v11 }
  0xa8   : > { %606 = vmatmul.bf16.gmra.mxu0 %v1122_v16 }
  0xa9   : > { %655 = vmatmul.bf16.gmra.mxu1 %v1126_v17  ;;  %704 = vmatmul.bf16.gmra.mxu2 %v1122_v16 }
  0xaa   : > { %753 = vmatmul.bf16.gmra.mxu3 %v1126_v17 }
  0xb5   : > { %v572_v18 = vpop.f32.mrf.mxu0 }
  0xb6   : > { %v621_v19 = vpop.f32.mrf.mxu1 }
  0xb7   : > { %v622_v20 = vadd.f32 %v621_v19, %v572_v18 }
  0xb9   : > { %v847_v26 = vmul.f32 %v622_v20, %v622_v20 }
  0xbc   : > { %v670_v21 = vpop.f32.mrf.mxu2 }
  0xbd   : > { %v719_v22 = vpop.f32.mrf.mxu3  ;;  %v574_v23 = vpop.f32.mrf.mxu0 }
  0xbe   : > { %v720_v24 = vadd.f32 %v719_v22, %v670_v21  ;;  %v623_v25 = vpop.f32.mrf.mxu1 }
  0xbf   : > { %v624_v27 = vadd.f32 %v623_v25, %v574_v23 }
  0xc0   : > { %v759_v28 = vpack.c.bf16 %v720_v24, %v622_v20  ;;  %v848_v38 = vmul.f32 %v720_v24, %v720_v24 }
  0xc1   : > { %v792_v29 = vadd.f32 %v624_v27, %v622_v20  ;;  %v849_v30 = vmul.f32 %v624_v27, %v624_v27 }
  0xc2   : > { %775 = vst [vmem:[%s1412_s26] sm:$0xff] %v759_v28 }
  0xc3   : > { %v879_v31 = vadd.f32 %v849_v30, %v847_v26 }
  0xc4   : > { %v672_v32 = vpop.f32.mrf.mxu2 }
  0xc5   : > { %v721_v33 = vpop.f32.mrf.mxu3  ;;  %v577_v34 = vpop.f32.mrf.mxu0 }
  0xc6   : > { %v722_v35 = vadd.f32 %v721_v33, %v672_v32  ;;  %v626_v36 = vpop.f32.mrf.mxu1 }
  0xc7   : > { %v627_v37 = vadd.f32 %v626_v36, %v577_v34 }
  0xc8   : > { %v760_v39 = vpack.c.bf16 %v722_v35, %v624_v27  ;;  %v813_v40 = vadd.f32 %v722_v35, %v720_v24  ;;  %v850_v41 = vmul.f32 %v722_v35, %v722_v35 }
  0xc9   : > { %v793_v42 = vadd.f32 %v792_v29, %v627_v37  ;;  %v851_v43 = vmul.f32 %v627_v37, %v627_v37 }
  0xca   : > { %776 = vst [vmem:[%s1412_s26 + $0x8] sm:$0xff] %v760_v39  ;;  %v900_v44 = vadd.f32 %v850_v41, %v848_v38 }
  0xcb   : > { %v880_v45 = vadd.f32 %v879_v31, %v851_v43 }
  0xcc   : > { %v675_v46 = vpop.f32.mrf.mxu2 }
  0xcd   : > { %v724_v47 = vpop.f32.mrf.mxu3  ;;  %v579_v48 = vpop.f32.mrf.mxu0 }
  0xce   : > { %v725_v49 = vadd.f32 %v724_v47, %v675_v46  ;;  %v628_v50 = vpop.f32.mrf.mxu1 }
  0xcf   : > { %v629_v51 = vadd.f32 %v628_v50, %v579_v48 }
  0xd0   : > { %v761_v52 = vpack.c.bf16 %v725_v49, %v627_v37  ;;  %v814_v53 = vadd.f32 %v813_v40, %v725_v49  ;;  %v852_v54 = vmul.f32 %v725_v49, %v725_v49 }
  0xd1   : > { %v794_v55 = vadd.f32 %v793_v42, %v629_v51  ;;  %v853_v56 = vmul.f32 %v629_v51, %v629_v51 }
  0xd2   : > { %777 = vst [vmem:[%s1412_s26 + $0x10] sm:$0xff] %v761_v52  ;;  %v901_v57 = vadd.f32 %v900_v44, %v852_v54 }
  0xd3   : > { %v881_v58 = vadd.f32 %v880_v45, %v853_v56 }
  0xd4   : > { %v677_v59 = vpop.f32.mrf.mxu2 }
  0xd5   : > { %v726_v60 = vpop.f32.mrf.mxu3  ;;  %v582_v61 = vpop.f32.mrf.mxu0 }
  0xd6   : > { %v727_v62 = vadd.f32 %v726_v60, %v677_v59  ;;  %v631_v63 = vpop.f32.mrf.mxu1 }
  0xd7   : > { %v632_v0 = vadd.f32 %v631_v63, %v582_v61 }
  0xd8   : > { %v762_v1 = vpack.c.bf16 %v727_v62, %v629_v51  ;;  %v815_v2 = vadd.f32 %v814_v53, %v727_v62  ;;  %v854_v3 = vmul.f32 %v727_v62, %v727_v62 }
  0xd9   : > { %v1647_v4 = vadd.f32 %v794_v55, %v632_v0  ;;  %v855_v5 = vmul.f32 %v632_v0, %v632_v0 }
  0xda   : > { %778 = vst [vmem:[%s1412_s26 + $0x18] sm:$0xff] %v762_v1  ;;  %v902_v6 = vadd.f32 %v901_v57, %v854_v3 }
  0xdb   : > { %v1650_v7 = vadd.f32 %v881_v58, %v855_v5 }
  0xdc   : > { %v680_v8 = vpop.f32.mrf.mxu2 }
  0xdd   : > { %v729_v9 = vpop.f32.mrf.mxu3  ;;  %v584_v10 = vpop.f32.mrf.mxu0 }
  0xde   : > { %v730_v11 = vadd.f32 %v729_v9, %v680_v8  ;;  %v633_v12 = vpop.f32.mrf.mxu1 }
  0xdf   : > { %v634_v20 = vadd.f32 %v633_v12, %v584_v10 }
  0xe0   : > { %v763_v13 = vpack.c.bf16 %v730_v11, %v632_v0  ;;  %v1652_v14 = vadd.f32 %v815_v2, %v730_v11  ;;  %v856_v15 = vmul.f32 %v730_v11, %v730_v11 }
  0xe1   : > { %v857_v2 = vmul.f32 %v634_v20, %v634_v20  ;;  %v796_v5 = vadd.f32 %v1647_v4, %v634_v20 }
  0xe2   : > { %779 = vst [vmem:[%s1412_s26 + $0x20] sm:$0xff] %v763_v13  ;;  %v1655_v16 = vadd.f32 %v902_v6, %v856_v15 }
  0xe3   : > { %v883_v13 = vadd.f32 %v1650_v7, %v857_v2 }
  0xe4   : > { %v682_v17 = vpop.f32.mrf.mxu2 }
  0xe5   : > { %v731_v18 = vpop.f32.mrf.mxu3  ;;  %v587_v19 = vpop.f32.mrf.mxu0 }
  0xe6   : > { %v1657_v21 = vadd.f32 %v731_v18, %v682_v17  ;;  %v636_v22 = vpop.f32.mrf.mxu1 }
  0xe7   : > { %v637_v27 = vadd.f32 %v636_v22, %v587_v19 }
  0xe8   : > { %v764_v23 = vpack.c.bf16 %v1657_v21, %v634_v20  ;;  %v858_v18 = vmul.f32 %v1657_v21, %v1657_v21 }
  0xe9   : > { %v859_v6 = vmul.f32 %v637_v27, %v637_v27  ;;  %v797_v15 = vadd.f32 %v796_v5, %v637_v27 }
  0xea   : > { %780 = vst [vmem:[%s1412_s26 + $0x28] sm:$0xff] %v764_v23 }
  0xeb   : > { %v884_v22 = vadd.f32 %v883_v13, %v859_v6 }
  0xec   : > { %v685_v24 = vpop.f32.mrf.mxu2 }
  0xed   : > { %v734_v25 = vpop.f32.mrf.mxu3  ;;  %v589_v26 = vpop.f32.mrf.mxu0 }
  0xee   : > { %v1661_v28 = vadd.f32 %v734_v25, %v685_v24  ;;  %v638_v29 = vpop.f32.mrf.mxu1  ;;  %v817_v24 = vadd.f32 %v1652_v14, %v1657_v21 }
  0xef   : > { %v639_v34 = vadd.f32 %v638_v29, %v589_v26 }
  0xf0   : > { %v765_v30 = vpack.c.bf16 %v1661_v28, %v637_v27  ;;  %v860_v20 = vmul.f32 %v1661_v28, %v1661_v28  ;;  %v904_v27 = vadd.f32 %v1655_v16, %v858_v18 }
  0xf1   : > { %v861_v17 = vmul.f32 %v639_v34, %v639_v34  ;;  %v798_v23 = vadd.f32 %v797_v15, %v639_v34 }
  0xf2   : > { %781 = vst [vmem:[%s1412_s26 + $0x30] sm:$0xff] %v765_v30 }
  0xf3   : > { %v885_v25 = vadd.f32 %v884_v22, %v861_v17 }
  0xf4   : > { %v687_v31 = vpop.f32.mrf.mxu2 }
  0xf5   : > { %v736_v32 = vpop.f32.mrf.mxu3  ;;  %v592_v33 = vpop.f32.mrf.mxu0 }
  0xf6   : > { %v1665_v35 = vadd.f32 %v736_v32, %v687_v31  ;;  %v641_v36 = vpop.f32.mrf.mxu1  ;;  %v818_v31 = vadd.f32 %v817_v24, %v1661_v28 }
  0xf7   : > { %v642_v41 = vadd.f32 %v641_v36, %v592_v33 }
  0xf8   : > { %v766_v37 = vpack.c.bf16 %v1665_v35, %v639_v34  ;;  %v862_v29 = vmul.f32 %v1665_v35, %v1665_v35 }
  0xf9   : > { %v863_v4 = vmul.f32 %v642_v41, %v642_v41  ;;  %v799_v26 = vadd.f32 %v798_v23, %v642_v41 }
  0xfa   : > { %782 = vst [vmem:[%s1412_s26 + $0x38] sm:$0xff] %v766_v37 }
  0xfb   : > { %v886_v32 = vadd.f32 %v885_v25, %v863_v4 }
  0xfc   : > { %v690_v38 = vpop.f32.mrf.mxu2 }
  0xfd   : > { %v739_v39 = vpop.f32.mrf.mxu3  ;;  %v594_v40 = vpop.f32.mrf.mxu0 }
  0xfe   : > { %v1669_v42 = vadd.f32 %v739_v39, %v690_v38  ;;  %v643_v43 = vpop.f32.mrf.mxu1  ;;  %v905_v38 = vadd.f32 %v904_v27, %v860_v20 }
  0xff   : > { %v644_v48 = vadd.f32 %v643_v43, %v594_v40 }
 0x100   : > { %v767_v44 = vpack.c.bf16 %v1669_v42, %v642_v41  ;;  %v864_v14 = vmul.f32 %v1669_v42, %v1669_v42 }
 0x101   : > { %v865_v7 = vmul.f32 %v644_v48, %v644_v48  ;;  %v800_v33 = vadd.f32 %v799_v26, %v644_v48 }
 0x102   : > { %783 = vst [vmem:[%s1412_s26 + $0x40] sm:$0xff] %v767_v44  ;;  %v819_v44 = vadd.f32 %v818_v31, %v1665_v35 }
 0x103   : > { %v887_v16 = vadd.f32 %v886_v32, %v865_v7 }
 0x104   : > { %v692_v45 = vpop.f32.mrf.mxu2 }
 0x105   : > { %v741_v46 = vpop.f32.mrf.mxu3  ;;  %v597_v47 = vpop.f32.mrf.mxu0 }
 0x106   : > { %v1673_v49 = vadd.f32 %v741_v46, %v692_v45  ;;  %v646_v50 = vpop.f32.mrf.mxu1  ;;  %v906_v45 = vadd.f32 %v905_v38, %v862_v29 }
 0x107   : > { %v647_v55 = vadd.f32 %v646_v50, %v597_v47 }
 0x108   : > { %v768_v51 = vpack.c.bf16 %v1673_v49, %v644_v48  ;;  %v866_v28 = vmul.f32 %v1673_v49, %v1673_v49 }
 0x109   : > { %v867_v34 = vmul.f32 %v647_v55, %v647_v55  ;;  %v801_v41 = vadd.f32 %v800_v33, %v647_v55 }
 0x10a   : > { %784 = vst [vmem:[%s1412_s26 + $0x48] sm:$0xff] %v768_v51 }
 0x10b   : > { %v888_v47 = vadd.f32 %v887_v16, %v867_v34 }
 0x10c   : > { %v695_v52 = vpop.f32.mrf.mxu2 }
 0x10d   : > { %v744_v53 = vpop.f32.mrf.mxu3  ;;  %v599_v54 = vpop.f32.mrf.mxu0 }
 0x10e   : > { %v1677_v56 = vadd.f32 %v744_v53, %v695_v52  ;;  %v648_v57 = vpop.f32.mrf.mxu1  ;;  %v820_v52 = vadd.f32 %v819_v44, %v1669_v42  ;;  %v907_v53 = vadd.f32 %v906_v45, %v864_v14 }
 0x10f   : > { %v649_v62 = vadd.f32 %v648_v57, %v599_v54 }
 0x110   : > { %v769_v58 = vpack.c.bf16 %v1677_v56, %v647_v55  ;;  %v868_v54 = vmul.f32 %v1677_v56, %v1677_v56  ;;  %v821_v35 = vadd.f32 %v820_v52, %v1673_v49 }
 0x111   : > { %v869_v43 = vmul.f32 %v649_v62, %v649_v62  ;;  %v802_v48 = vadd.f32 %v801_v41, %v649_v62 }
 0x112   : > { %785 = vst [vmem:[%s1412_s26 + $0x50] sm:$0xff] %v769_v58 }
 0x113   : > { %v889_v55 = vadd.f32 %v888_v47, %v869_v43 }
 0x114   : > { %v697_v59 = vpop.f32.mrf.mxu2 }
 0x115   : > { %v746_v60 = vpop.f32.mrf.mxu3  ;;  %v602_v61 = vpop.f32.mrf.mxu0 }
 0x116   : > { %v1681_v63 = vadd.f32 %v746_v60, %v697_v59  ;;  %v651_v0 = vpop.f32.mrf.mxu1  ;;  %v908_v59 = vadd.f32 %v907_v53, %v866_v28  ;;  %v841_v53 = vlaneseq }
 0x117   : > { %v652_v10 = vadd.f32 %v651_v0, %v602_v61 }
 0x118   : > { %v770_v1 = vpack.c.bf16 %v1681_v63, %v649_v62  ;;  %v870_v60 = vmul.f32 %v1681_v63, %v1681_v63  ;;  %v909_v5 = vadd.f32 %v908_v59, %v868_v54  ;;  %vm843_vm2 = vcmp.lt.s32.totalorder %v841_v53, 256 }
 0x119   : > { %v871_v50 = vmul.f32 %v652_v10, %v652_v10  ;;  %v803_v57 = vadd.f32 %v802_v48, %v652_v10 }
 0x11a   : > { %786 = vst [vmem:[%s1412_s26 + $0x58] sm:$0xff] %v770_v1  ;;  %v910_v15 = vadd.f32 %v909_v5, %v870_v60 }
 0x11b   : > { %v890_v62 = vadd.f32 %v889_v55, %v871_v50 }
 0x11c   : > { %v700_v3 = vpop.f32.mrf.mxu2 }
 0x11d   : > { %v749_v8 = vpop.f32.mrf.mxu3  ;;  %v604_v9 = vpop.f32.mrf.mxu0 }
 0x11e   : > { %v1686_v11 = vadd.f32 %v749_v8, %v700_v3  ;;  %v653_v12 = vpop.f32.mrf.mxu1  ;;  %v822_v3 = vadd.f32 %v821_v35, %v1677_v56 }
 0x11f   : > { %v654_v21 = vadd.f32 %v653_v12, %v604_v9 }
 0x120   : > { %v771_v19 = vpack.c.bf16 %v1686_v11, %v652_v10  ;;  %v872_v9 = vmul.f32 %v1686_v11, %v1686_v11  ;;  %v823_v13 = vadd.f32 %v822_v3, %v1681_v63 }
 0x121   : > { %v873_v58 = vmul.f32 %v654_v21, %v654_v21  ;;  %v804_v0 = vadd.f32 %v803_v57, %v654_v21  ;;  %v791_v57 = vld [vmem:[%s1744_s3] sm:$0x3] }
 0x122   : > { %787 = vst [vmem:[%s1412_s26 + $0x60] sm:$0xff] %v771_v19  ;;  %v824_v56 = vadd.f32 %v823_v13, %v1686_v11  ;;  %v911_v4 = vadd.f32 %v910_v15, %v872_v9 }
 0x123   : > { %v891_v49 = vadd.f32 %v890_v62, %v873_v58 }
 0x124   : > { %v702_v30 = vpop.f32.mrf.mxu2 }
 0x125   : > { %v751_v36 = vpop.f32.mrf.mxu3  ;;  %v607_v37 = vpop.f32.mrf.mxu0 }
 0x126   : > { %v752_v39 = vadd.f32 %v751_v36, %v702_v30  ;;  %v656_v40 = vpop.f32.mrf.mxu1 }
 0x127   : > { %v657_v51 = vadd.f32 %v656_v40, %v607_v37 }
 0x128   : > { %v772_v46 = vpack.c.bf16 %v752_v39, %v654_v21  ;;  %v874_v18 = vmul.f32 %v752_v39, %v752_v39  ;;  %v825_v26 = vadd.f32 %v824_v56, %v752_v39 }
 0x129   : > { %v875_v1 = vmul.f32 %v657_v51, %v657_v51  ;;  %v805_v10 = vadd.f32 %v804_v0, %v657_v51 }
 0x12a   : > { %788 = vst [vmem:[%s1412_s26 + $0x68] sm:$0xff] %v772_v46  ;;  %v912_v27 = vadd.f32 %v911_v4, %v874_v18 }
 0x12b   : > { %v892_v19 = vadd.f32 %v891_v49, %v875_v1 }
 0x12c   : > { %v705_v61 = vpop.f32.mrf.mxu2 }
 0x12d   : > { %v754_v2 = vpop.f32.mrf.mxu3  ;;  %v609_v42 = vpop.f32.mrf.mxu0 }
 0x12e   : > { %v755_v6 = vadd.f32 %v754_v2, %v705_v61  ;;  %v658_v8 = vpop.f32.mrf.mxu1  ;;  %v846_v61 = vld [vmem:[%s1745_s4] sm:$0x3] }
 0x12f   : > { %v659_v12 = vadd.f32 %v658_v8, %v609_v42 }
 0x130   : > { %v773_v17 = vpack.c.bf16 %v755_v6, %v657_v51  ;;  %v876_v20 = vmul.f32 %v755_v6, %v755_v6  ;;  %v826_v63 = vadd.f32 %v825_v26, %v755_v6 }
 0x131   : > { %v806_v22 = vadd.f32 %v805_v10, %v659_v12  ;;  %v877_v23 = vmul.f32 %v659_v12, %v659_v12 }
 0x132   : > { %789 = vst [vmem:[%s1412_s26 + $0x70] sm:$0xff] %v773_v17  ;;  %v913_v33 = vadd.f32 %v912_v27, %v876_v20 }
 0x133   : > { %v807_v24 = vrot.slane %v806_v22, 4  ;;  %v893_v25 = vadd.f32 %v892_v19, %v877_v23 }
 0x134   : > { %v707_v7 = vpop.f32.mrf.mxu2 }
 0x135   : > { %v894_v29 = vrot.slane %v893_v25, 4  ;;  %v756_v30 = vpop.f32.mrf.mxu3  ;;  %v808_v31 = vadd.f32 %v807_v24, %v806_v22 }
 0x136   : > { %v757_v32 = vadd.f32 %v756_v30, %v707_v7 }
 0x137   : > { %v895_v34 = vadd.f32 %v894_v29, %v893_v25  ;;  %v809_v11 = vrot.slane %v808_v31, 2 }
 0x138   : > { %v774_v36 = vpack.c.bf16 %v757_v32, %v659_v12  ;;  %v827_v37 = vadd.f32 %v826_v63, %v757_v32  ;;  %v878_v38 = vmul.f32 %v757_v32, %v757_v32 }
 0x139   : > { %v896_v40 = vrot.slane %v895_v34, 2  ;;  %v810_v39 = vadd.f32 %v809_v11, %v808_v31 }
 0x13a   : > { %790 = vst [vmem:[%s1412_s26 + $0x78] sm:$0xff] %v774_v36  ;;  %v828_v14 = vrot.slane %v827_v37, 4  ;;  %v914_v21 = vadd.f32 %v913_v33, %v878_v38 }
 0x13b   : > { %v897_v45 = vadd.f32 %v896_v40, %v895_v34  ;;  %v811_v47 = vrot.slane %v810_v39, 1 }
 0x13c   : > { %v829_v16 = vadd.f32 %v828_v14, %v827_v37  ;;  %v915_v41 = vrot.slane %v914_v21, 4 }
 0x13d   : > { %v898_v51 = vrot.slane %v897_v45, 1  ;;  %v812_v55 = vadd.f32 %v811_v47, %v810_v39 }
 0x13e   : > { %v830_v43 = vrot.slane %v829_v16, 2  ;;  %v916_v44 = vadd.f32 %v915_v41, %v914_v21 }
 0x13f   : > { %v899_v59 = vadd.f32 %v898_v51, %v897_v45 }
 0x140   : > { %v831_v28 = vadd.f32 %v830_v43, %v829_v16  ;;  %v917_v46 = vrot.slane %v916_v44, 2 }
 0x142   : > { %v832_v48 = vrot.slane %v831_v28, 1  ;;  %v918_v50 = vadd.f32 %v917_v46, %v916_v44 }
 0x144   : > { %v833_v52 = vadd.f32 %v832_v48, %v831_v28  ;;  %v919_v54 = vrot.slane %v918_v50, 1 }
 0x146   : > { %v836_v58 = vrot.slane %v833_v52, 7  ;;  %v920_v35 = vadd.f32 %v919_v54, %v918_v50 }
 0x148   : > { %v838_v60 = vsel %vm837_vm1, %v812_v55, %v836_v58  ;;  %v923_v62 = vrot.slane %v920_v35, 7 }
 0x149   : > { %v840_v0 = vadd.f32 %v838_v60, %v791_v57 }
 0x14a   : > { %v924_v1 = vsel %vm837_vm1, %v899_v59, %v923_v62 }
 0x14b   : > { %845 = vst.msk [vmem:[%s1744_s3] sm:$0x3] %vm843_vm2, %v840_v0  ;;  %v926_v2 = vadd.f32 %v924_v1, %v846_v61 }
 0x14d   : > { %927 = vst.msk [vmem:[%s1745_s4] sm:$0x3] %vm843_vm2, %v926_v2 }
 0x14e PF: > { %s15_s17 = sadd.s32 1, %s1358_s17   ;;  %s1746_s15 = smov %s1354_s16 }
 0x14f   : > { %p12_p6 = scmp.ge.s32.totalorder %s15_s17, 5   ;;  %s1747_s16 = smov %s1749_s18 }
 0x151   :  { %14 = sbr.rel (!%p12_p6) target bundleno = 2 (0x2), region = 86 }

// kernel: b2d_2d_forward.5
= control target key start
LH: loop header
LB: loop body
LE: loop exit
PB: predicated region body
PF: predicated region fallthrough
CT: control target
= control target key end

     0   :  { %s944_s18 = smov 0   ;;  %s946_s19 = smov 0   ;;  %s1167_s0 = inlined_call_operand.vmem [shape: bf16[384,256], index: 0, kind: input, shape index: {}]   ;;  %s1168_s1 = inlined_call_operand.vmem [shape: f32[1,256], index: 1, kind: input, shape index: {}]   ;;  %s1169_s2 = inlined_call_operand.vmem [shape: f32[1,256], index: 2, kind: input, shape index: {}]   ;;  %s1170_s3 = inlined_call_operand.vmem [shape: bf16[256,128], index: 3, kind: input, shape index: {}]   ;;  %s1171_s4 = inlined_call_operand.vmem [shape: f32[1,128], index: 4, kind: input, shape index: {}]   ;;  %s1172_s5 = inlined_call_operand.vmem [shape: f32[384,128], index: 5, kind: output, shape index: {}]  }
   0x1   :  { %s948_s20 = smov 0  }
   0x2 LB: > { %s24_s21 = sadd.s32 1, %s908_s19  ;;  %p760_p0 = scmp.ge.s32.totalorder %s912_s20, 1  ;;  %s912_s20 = sphi %s948_s20, %s15_s20   ;;  %s908_s19 = sphi %s946_s19, %s1174_s19   ;;  %s904_s18 = sphi %s944_s18, %s1173_s18  }
   0x3   : > { %p25_p1 = scmp.ge.s32.totalorder %s24_s21, 3  ;;  %p213_p2 = scmp.lt.s32.totalorder %s912_s20, 4 }
   0x5   : > { %s1176_s21 = smov (%p25_p1, %s24_s21), 0  ;;  %p214_p3 = pnand %p760_p0, %p213_p2 }
   0x6   : > { %s761_s26 = sshll.u32 (!%p214_p3), %s904_s18, 4 }
   0x7   : > { %217 = sbr.rel (%p214_p3) target bundleno = 237 (0xed), region = 40  ;;  %p249_p4 = scmp.lt.s32.totalorder (!%p214_p3), %s761_s26, 47 }
   0xc   : > { %v840_v0 = vld [vmem:[%s1170_s3 + $0x38] sm:$0xff]  ;;  %v839_v2 = vld [vmem:[%s1170_s3 + $0x30] sm:$0xff]  ;;  %s1178_s26 = smov (!%p249_p4, %s761_s26), 47  ;;  %v838_v4 = vld [vmem:[%s1170_s3 + $0x28] sm:$0xff] }
   0xd   : > { %v848_v1 = vld [vmem:[%s1170_s3 + $0x78] sm:$0xff]  ;;  %571 = vmatpush.bf16.msra.mxu0 %v840_v0  ;;  %849 = vmatpush.bf16.msra.mxu2 %v840_v0  ;;  %v847_v3 = vld [vmem:[%s1170_s3 + $0x70] sm:$0xff]  ;;  %s832_s6 = sshll.u32 %s1178_s26, 3  ;;  %v846_v5 = vld [vmem:[%s1170_s3 + $0x68] sm:$0xff] }
   0xe   : > { %620 = vmatpush.bf16.msra.mxu1 %v848_v1  ;;  %857 = vmatpush.bf16.msra.mxu3 %v848_v1  ;;  %s985_s11 = scalar_lea.vmem %s1167_s0, %s832_s6  ;;  %v315_v7 = vld [vmem:[%s1168_s1] sm:$0x3]  ;;  %v836_v22 = vld [vmem:[%s1170_s3 + $0x18] sm:$0xff]  ;;  %v835_v34 = vld [vmem:[%s1170_s3 + $0x10] sm:$0xff]  ;;  %s1125_s25 = scalar_lea.vmem %s1172_s5, %s832_s6 }
   0xf   : > { %v267_v6 = vld [vmem:[%s985_s11] sm:$0xff]  ;;  %v268_v8 = vld [vmem:[%s985_s11 + $0x8] sm:$0xff]  ;;  %v1003_v13 = vperm.slane %v315_v7, 0  ;;  %v1008_v21 = vperm.slane %v315_v7, 1  ;;  %v844_v25 = vld [vmem:[%s1170_s3 + $0x58] sm:$0xff] }
  0x10   : > { %v275_v9 = vld [vmem:[%s985_s11 + $0x40] sm:$0xff]  ;;  %v276_v10 = vld [vmem:[%s985_s11 + $0x48] sm:$0xff]  ;;  %v283_v14 = vunpack.c.l.bf16 %v267_v6  ;;  %v285_v15 = vunpack.c.l.bf16 %v268_v8  ;;  %v284_v19 = vunpack.c.h.bf16 %v267_v6  ;;  %v286_v20 = vunpack.c.h.bf16 %v268_v8  ;;  %v843_v37 = vld [vmem:[%s1170_s3 + $0x50] sm:$0xff] }
  0x11   : > { %572 = vmatpush.bf16.msra.mxu0 %v839_v2  ;;  %850 = vmatpush.bf16.msra.mxu2 %v839_v2  ;;  %v837_v11 = vld [vmem:[%s1170_s3 + $0x20] sm:$0xff]  ;;  %v299_v17 = vunpack.c.l.bf16 %v275_v9  ;;  %v301_v18 = vunpack.c.l.bf16 %v276_v10  ;;  %v300_v23 = vunpack.c.h.bf16 %v275_v9  ;;  %v302_v24 = vunpack.c.h.bf16 %v276_v10  ;;  %v834_v44 = vld [vmem:[%s1170_s3 + $0x8] sm:$0xff]  ;;  %v269_v54 = vld [vmem:[%s985_s11 + $0x10] sm:$0xff] }
  0x12   : > { %621 = vmatpush.bf16.msra.mxu1 %v847_v3  ;;  %858 = vmatpush.bf16.msra.mxu3 %v847_v3  ;;  %v845_v12 = vld [vmem:[%s1170_s3 + $0x60] sm:$0xff]  ;;  %v321_v27 = vmul.f32 %v1003_v13, %v283_v14  ;;  %v323_v28 = vmul.f32 %v1003_v13, %v285_v15  ;;  %v322_v31 = vmul.f32 %v1008_v21, %v284_v19  ;;  %v842_v47 = vld [vmem:[%s1170_s3 + $0x48] sm:$0xff]  ;;  %v270_v55 = vld [vmem:[%s985_s11 + $0x18] sm:$0xff]  ;;  %v287_v0 = vunpack.c.l.bf16 %v269_v54 }
  0x13   : > { %v353_v16 = vld [vmem:[%s1169_s2] sm:$0x3]  ;;  %v337_v29 = vmul.f32 %v1003_v13, %v299_v17  ;;  %v339_v30 = vmul.f32 %v1003_v13, %v301_v18  ;;  %v324_v32 = vmul.f32 %v1008_v21, %v286_v20  ;;  %v338_v35 = vmul.f32 %v1008_v21, %v300_v23  ;;  %v277_v59 = vld [vmem:[%s985_s11 + $0x50] sm:$0xff]  ;;  %v278_v60 = vld [vmem:[%s985_s11 + $0x58] sm:$0xff] }
  0x14   : > { %v1016_v26 = vperm.slane %v353_v16, 0  ;;  %v1024_v33 = vperm.slane %v353_v16, 1  ;;  %v340_v36 = vmul.f32 %v1008_v21, %v302_v24  ;;  %v833_v56 = vld [vmem:[%s1170_s3] sm:$0xff]  ;;  %v289_v1 = vunpack.c.l.bf16 %v270_v55 }
  0x15   : > { %573 = vmatpush.bf16.msra.mxu0 %v838_v4  ;;  %851 = vmatpush.bf16.msra.mxu2 %v838_v4  ;;  %v841_v61 = vld [vmem:[%s1170_s3 + $0x40] sm:$0xff]  ;;  %v303_v3 = vunpack.c.l.bf16 %v277_v59  ;;  %v305_v4 = vunpack.c.l.bf16 %v278_v60  ;;  %v290_v7 = vunpack.c.h.bf16 %v270_v55  ;;  %v304_v8 = vunpack.c.h.bf16 %v277_v59 }
  0x16   : > { %622 = vmatpush.bf16.msra.mxu1 %v846_v5  ;;  %859 = vmatpush.bf16.msra.mxu3 %v846_v5  ;;  %v359_v38 = vadd.f32 %v1016_v26, %v321_v27  ;;  %v361_v39 = vadd.f32 %v1016_v26, %v323_v28  ;;  %v375_v40 = vadd.f32 %v1016_v26, %v337_v29  ;;  %v288_v5 = vunpack.c.h.bf16 %v269_v54  ;;  %v271_v29 = vld [vmem:[%s985_s11 + $0x20] sm:$0xff] }
  0x17   : > { %v377_v41 = vadd.f32 %v1016_v26, %v339_v30  ;;  %v360_v42 = vadd.f32 %v1024_v33, %v322_v31  ;;  %v362_v43 = vadd.f32 %v1024_v33, %v324_v32  ;;  %v376_v45 = vadd.f32 %v1024_v33, %v338_v35  ;;  %v272_v30 = vld [vmem:[%s985_s11 + $0x28] sm:$0xff] }
  0x18   : > { %v378_v46 = vadd.f32 %v1024_v33, %v340_v36  ;;  %v391_v48 = vmax.f32 %v359_v38, 0.0  ;;  %v393_v49 = vmax.f32 %v361_v39, 0.0  ;;  %v407_v50 = vmax.f32 %v375_v40, 0.0  ;;  %v279_v36 = vld [vmem:[%s985_s11 + $0x60] sm:$0xff] }
  0x19   : > { %574 = vmatpush.bf16.msra.mxu0 %v837_v11  ;;  %852 = vmatpush.bf16.msra.mxu2 %v837_v11  ;;  %v409_v51 = vmax.f32 %v377_v41, 0.0  ;;  %v392_v52 = vmax.f32 %v360_v42, 0.0  ;;  %v394_v53 = vmax.f32 %v362_v43, 0.0  ;;  %v408_v57 = vmax.f32 %v376_v45, 0.0 }
  0x1a   : > { %623 = vmatpush.bf16.msra.mxu1 %v845_v12  ;;  %860 = vmatpush.bf16.msra.mxu3 %v845_v12  ;;  %v410_v58 = vmax.f32 %v378_v46, 0.0  ;;  %v423_v62 = vpack.c.bf16 %v393_v49, %v391_v48  ;;  %v306_v9 = vunpack.c.h.bf16 %v278_v60  ;;  %v325_v10 = vmul.f32 %v1003_v13, %v287_v0 }
  0x1b   : > { %v431_v63 = vpack.c.bf16 %v409_v51, %v407_v50  ;;  %v424_v2 = vpack.c.bf16 %v394_v53, %v392_v52  ;;  %v327_v11 = vmul.f32 %v1003_v13, %v289_v1  ;;  %v341_v12 = vmul.f32 %v1003_v13, %v303_v3 }
  0x1c   : > { %v432_v6 = vpack.c.bf16 %v410_v58, %v408_v57  ;;  %v343_v14 = vmul.f32 %v1003_v13, %v305_v4  ;;  %v326_v15 = vmul.f32 %v1008_v21, %v288_v5  ;;  %v328_v16 = vmul.f32 %v1008_v21, %v290_v7 }
  0x1d   : > { %575 = vmatpush.bf16.msra.mxu0 %v836_v22  ;;  %853 = vmatpush.bf16.msra.mxu2 %v836_v22  ;;  %v342_v17 = vmul.f32 %v1008_v21, %v304_v8  ;;  %v344_v18 = vmul.f32 %v1008_v21, %v306_v9  ;;  %v363_v19 = vadd.f32 %v1016_v26, %v325_v10  ;;  %v291_v42 = vunpack.c.l.bf16 %v271_v29 }
  0x1e   : > { %624 = vmatpush.bf16.msra.mxu1 %v844_v25  ;;  %861 = vmatpush.bf16.msra.mxu3 %v844_v25  ;;  %v365_v20 = vadd.f32 %v1016_v26, %v327_v11  ;;  %v379_v22 = vadd.f32 %v1016_v26, %v341_v12  ;;  %v381_v23 = vadd.f32 %v1016_v26, %v343_v14  ;;  %v293_v43 = vunpack.c.l.bf16 %v272_v30  ;;  %v273_v12 = vld [vmem:[%s985_s11 + $0x30] sm:$0xff]  ;;  %v274_v14 = vld [vmem:[%s985_s11 + $0x38] sm:$0xff] }
  0x1f   : > { %v364_v24 = vadd.f32 %v1024_v33, %v326_v15  ;;  %v366_v25 = vadd.f32 %v1024_v33, %v328_v16  ;;  %v380_v27 = vadd.f32 %v1024_v33, %v342_v17  ;;  %v382_v28 = vadd.f32 %v1024_v33, %v344_v18  ;;  %v281_v17 = vld [vmem:[%s985_s11 + $0x70] sm:$0xff]  ;;  %v282_v18 = vld [vmem:[%s985_s11 + $0x78] sm:$0xff] }
  0x20   : > { %v395_v31 = vmax.f32 %v363_v19, 0.0  ;;  %v397_v32 = vmax.f32 %v365_v20, 0.0  ;;  %v413_v35 = vmax.f32 %v381_v23, 0.0  ;;  %v292_v48 = vunpack.c.h.bf16 %v271_v29 }
  0x21   : > { %576 = vmatpush.bf16.msra.mxu0 %v835_v34  ;;  %854 = vmatpush.bf16.msra.mxu2 %v835_v34  ;;  %v411_v34 = vmax.f32 %v379_v22, 0.0  ;;  %v396_v38 = vmax.f32 %v364_v24, 0.0  ;;  %v398_v39 = vmax.f32 %v366_v25, 0.0  ;;  %v412_v40 = vmax.f32 %v380_v27, 0.0 }
  0x22   : > { %625 = vmatpush.bf16.msra.mxu1 %v843_v37  ;;  %862 = vmatpush.bf16.msra.mxu3 %v843_v37  ;;  %v280_v37 = vld [vmem:[%s985_s11 + $0x68] sm:$0xff]  ;;  %v414_v41 = vmax.f32 %v382_v28, 0.0  ;;  %v425_v46 = vpack.c.bf16 %v397_v32, %v395_v31  ;;  %v294_v49 = vunpack.c.h.bf16 %v272_v30  ;;  %v308_v52 = vunpack.c.h.bf16 %v279_v36 }
  0x23   : > { %v309_v45 = vunpack.c.l.bf16 %v280_v37  ;;  %v426_v50 = vpack.c.bf16 %v398_v39, %v396_v38  ;;  %v310_v53 = vunpack.c.h.bf16 %v280_v37  ;;  %v329_v54 = vmul.f32 %v1003_v13, %v291_v42 }
  0x24   : > { %v434_v51 = vpack.c.bf16 %v414_v41, %v412_v40  ;;  %v331_v55 = vmul.f32 %v1003_v13, %v293_v43  ;;  %v330_v58 = vmul.f32 %v1008_v21, %v292_v48  ;;  %v332_v59 = vmul.f32 %v1008_v21, %v294_v49 }
  0x25   : > { %577 = vmatpush.bf16.msra.mxu0 %v834_v44  ;;  %855 = vmatpush.bf16.msra.mxu2 %v834_v44  ;;  %v307_v44 = vunpack.c.l.bf16 %v279_v36  ;;  %v347_v57 = vmul.f32 %v1003_v13, %v309_v45  ;;  %v346_v60 = vmul.f32 %v1008_v21, %v308_v52  ;;  %v295_v22 = vunpack.c.l.bf16 %v273_v12 }
  0x26   : > { %626 = vmatpush.bf16.msra.mxu1 %v842_v47  ;;  %863 = vmatpush.bf16.msra.mxu3 %v842_v47  ;;  %v433_v47 = vpack.c.bf16 %v413_v35, %v411_v34  ;;  %v370_v3 = vadd.f32 %v1024_v33, %v332_v59  ;;  %v297_v23 = vunpack.c.l.bf16 %v274_v14  ;;  %v311_v25 = vunpack.c.l.bf16 %v281_v17 }
  0x27   : > { %v385_v1 = vadd.f32 %v1016_v26, %v347_v57  ;;  %v384_v4 = vadd.f32 %v1024_v33, %v346_v60  ;;  %v313_v27 = vunpack.c.l.bf16 %v282_v18  ;;  %v296_v28 = vunpack.c.h.bf16 %v273_v12 }
  0x28   : > { %v402_v11 = vmax.f32 %v370_v3, 0.0  ;;  %v298_v30 = vunpack.c.h.bf16 %v274_v14  ;;  %v312_v31 = vunpack.c.h.bf16 %v281_v17  ;;  %v314_v32 = vunpack.c.h.bf16 %v282_v18 }
  0x29   : > { %578 = vmatpush.bf16.msra.mxu0 %v833_v56  ;;  %856 = vmatpush.bf16.msra.mxu2 %v833_v56  ;;  %v345_v56 = vmul.f32 %v1003_v13, %v307_v44  ;;  %v417_v9 = vmax.f32 %v385_v1, 0.0  ;;  %v416_v15 = vmax.f32 %v384_v4, 0.0  ;;  %v333_v34 = vmul.f32 %v1003_v13, %v295_v22 }
  0x2a   : > { %627 = vmatpush.bf16.msra.mxu1 %v841_v61  ;;  %864 = vmatpush.bf16.msra.mxu3 %v841_v61  ;;  %v348_v61 = vmul.f32 %v1008_v21, %v310_v53  ;;  %v335_v35 = vmul.f32 %v1003_v13, %v297_v23  ;;  %v349_v36 = vmul.f32 %v1003_v13, %v311_v25 }
  0x2b   : > { %v383_v0 = vadd.f32 %v1016_v26, %v345_v56  ;;  %v351_v37 = vmul.f32 %v1003_v13, %v313_v27  ;;  %v334_v38 = vmul.f32 %v1008_v21, %v296_v28  ;;  %v336_v39 = vmul.f32 %v1008_v21, %v298_v30 }
  0x2c   : > { %579 = vmatmul.bf16.vlgmr.msra.gmra.mxu0 %v423_v62  ;;  %599 = vmatmul.bf16.vlgmr.msra.gmra.mxu2 %v431_v63  ;;  %v367_v62 = vadd.f32 %v1016_v26, %v329_v54  ;;  %v369_v63 = vadd.f32 %v1016_v26, %v331_v55  ;;  %v386_v5 = vadd.f32 %v1024_v33, %v348_v61 }
  0x2d   : > { %628 = vmatmul.bf16.vlgmr.msra.gmra.mxu1 %v424_v2  ;;  %648 = vmatmul.bf16.vlgmr.msra.gmra.mxu3 %v432_v6  ;;  %v368_v2 = vadd.f32 %v1024_v33, %v330_v58  ;;  %v415_v8 = vmax.f32 %v383_v0, 0.0  ;;  %v350_v40 = vmul.f32 %v1008_v21, %v312_v31  ;;  %v352_v41 = vmul.f32 %v1008_v21, %v314_v32 }
  0x2e   : > { %v399_v6 = vmax.f32 %v367_v62, 0.0  ;;  %v401_v7 = vmax.f32 %v369_v63, 0.0  ;;  %v418_v16 = vmax.f32 %v386_v5, 0.0  ;;  %v371_v42 = vadd.f32 %v1016_v26, %v333_v34 }
  0x2f   : > { %v400_v10 = vmax.f32 %v368_v2, 0.0  ;;  %v435_v20 = vpack.c.bf16 %v417_v9, %v415_v8  ;;  %v373_v43 = vadd.f32 %v1016_v26, %v335_v35  ;;  %v387_v44 = vadd.f32 %v1016_v26, %v349_v36 }
  0x30   : > { %v427_v19 = vpack.c.bf16 %v401_v7, %v399_v6  ;;  %v436_v29 = vpack.c.bf16 %v418_v16, %v416_v15  ;;  %v389_v45 = vadd.f32 %v1016_v26, %v351_v37  ;;  %v372_v13 = vadd.f32 %v1024_v33, %v334_v38 }
  0x31   : > { %v428_v24 = vpack.c.bf16 %v402_v11, %v400_v10  ;;  %v390_v48 = vadd.f32 %v1024_v33, %v352_v41  ;;  %v403_v49 = vmax.f32 %v371_v42, 0.0 }
  0x32   : > { %v421_v21 = vmax.f32 %v389_v45, 0.0  ;;  %v404_v52 = vmax.f32 %v372_v13, 0.0 }
  0x33   : > { %v422_v55 = vmax.f32 %v390_v48, 0.0 }
  0x3c   : > { %584 = vmatmul.bf16.gmra.mxu0 %v425_v46  ;;  %604 = vmatmul.bf16.gmra.mxu2 %v433_v47  ;;  %v374_v46 = vadd.f32 %v1024_v33, %v336_v39  ;;  %v388_v47 = vadd.f32 %v1024_v33, %v350_v40  ;;  %v1117_v33 = vld [vmem:[%s1171_s4] ss:$0 sm:$0xff] }
  0x3d   : > { %633 = vmatmul.bf16.gmra.mxu1 %v426_v50  ;;  %653 = vmatmul.bf16.gmra.mxu3 %v434_v51  ;;  %v405_v50 = vmax.f32 %v373_v43, 0.0  ;;  %v419_v51 = vmax.f32 %v387_v44, 0.0 }
  0x3e   : > { %v406_v53 = vmax.f32 %v374_v46, 0.0  ;;  %v420_v54 = vmax.f32 %v388_v47, 0.0 }
  0x3f   : > { %v429_v56 = vpack.c.bf16 %v405_v50, %v403_v49  ;;  %v437_v57 = vpack.c.bf16 %v421_v21, %v419_v51 }
  0x40   : > { %v430_v26 = vpack.c.bf16 %v406_v53, %v404_v52  ;;  %v438_v58 = vpack.c.bf16 %v422_v55, %v420_v54 }
  0x4c   : > { %589 = vmatmul.bf16.gmra.mxu0 %v427_v19  ;;  %609 = vmatmul.bf16.gmra.mxu2 %v435_v20 }
  0x4d   : > { %638 = vmatmul.bf16.gmra.mxu1 %v428_v24  ;;  %658 = vmatmul.bf16.gmra.mxu3 %v436_v29 }
  0x5c   : > { %594 = vmatmul.bf16.gmra.mxu0 %v429_v56  ;;  %614 = vmatmul.bf16.gmra.mxu2 %v437_v57 }
  0x5d   : > { %643 = vmatmul.bf16.gmra.mxu1 %v430_v26  ;;  %663 = vmatmul.bf16.gmra.mxu3 %v438_v58 }
  0xa9   : > { %v580_v59 = vpop.f32.mrf.mxu0 }
  0xaa   : > { %v581_v60 = vadd.f32 %v1117_v33, %v580_v59  ;;  %v629_v61 = vpop.f32.mrf.mxu1 }
  0xac   : > { %v630_v62 = vadd.f32 %v629_v61, %v581_v60 }
  0xae   : > { %669 = vst [vmem:[%s1125_s25] sm:$0xff] %v630_v62 }
  0xaf   : > { %v600_v63 = vpop.f32.mrf.mxu2 }
  0xb0   : > { %v601_v0 = vadd.f32 %v1117_v33, %v600_v63  ;;  %v649_v1 = vpop.f32.mrf.mxu3 }
  0xb1   : > { %v582_v2 = vpop.f32.mrf.mxu0 }
  0xb2   : > { %v650_v3 = vadd.f32 %v649_v1, %v601_v0  ;;  %v583_v4 = vadd.f32 %v1117_v33, %v582_v2  ;;  %v631_v5 = vpop.f32.mrf.mxu1 }
  0xb4   : > { %677 = vst [vmem:[%s1125_s25 + $0x40] sm:$0xff] %v650_v3  ;;  %v632_v6 = vadd.f32 %v631_v5, %v583_v4 }
  0xb6   : > { %670 = vst [vmem:[%s1125_s25 + $0x8] sm:$0xff] %v632_v6 }
  0xb7   : > { %v602_v7 = vpop.f32.mrf.mxu2 }
  0xb8   : > { %v603_v8 = vadd.f32 %v1117_v33, %v602_v7  ;;  %v651_v9 = vpop.f32.mrf.mxu3 }
  0xb9   : > { %v585_v10 = vpop.f32.mrf.mxu0 }
  0xba   : > { %v652_v11 = vadd.f32 %v651_v9, %v603_v8  ;;  %v586_v12 = vadd.f32 %v1117_v33, %v585_v10  ;;  %v634_v14 = vpop.f32.mrf.mxu1 }
  0xbc   : > { %678 = vst [vmem:[%s1125_s25 + $0x48] sm:$0xff] %v652_v11  ;;  %v635_v15 = vadd.f32 %v634_v14, %v586_v12 }
  0xbe   : > { %671 = vst [vmem:[%s1125_s25 + $0x10] sm:$0xff] %v635_v15 }
  0xbf   : > { %v605_v16 = vpop.f32.mrf.mxu2 }
  0xc0   : > { %v606_v17 = vadd.f32 %v1117_v33, %v605_v16  ;;  %v654_v18 = vpop.f32.mrf.mxu3 }
  0xc1   : > { %v587_v19 = vpop.f32.mrf.mxu0 }
  0xc2   : > { %v655_v20 = vadd.f32 %v654_v18, %v606_v17  ;;  %v588_v22 = vadd.f32 %v1117_v33, %v587_v19  ;;  %v636_v23 = vpop.f32.mrf.mxu1 }
  0xc4   : > { %679 = vst [vmem:[%s1125_s25 + $0x50] sm:$0xff] %v655_v20  ;;  %v637_v24 = vadd.f32 %v636_v23, %v588_v22 }
  0xc6   : > { %672 = vst [vmem:[%s1125_s25 + $0x18] sm:$0xff] %v637_v24 }
  0xc7   : > { %v607_v25 = vpop.f32.mrf.mxu2 }
  0xc8   : > { %v608_v27 = vadd.f32 %v1117_v33, %v607_v25  ;;  %v656_v28 = vpop.f32.mrf.mxu3 }
  0xc9   : > { %v590_v29 = vpop.f32.mrf.mxu0 }
  0xca   : > { %v657_v30 = vadd.f32 %v656_v28, %v608_v27  ;;  %v591_v31 = vadd.f32 %v1117_v33, %v590_v29  ;;  %v639_v32 = vpop.f32.mrf.mxu1 }
  0xcc   : > { %680 = vst [vmem:[%s1125_s25 + $0x58] sm:$0xff] %v657_v30  ;;  %v640_v34 = vadd.f32 %v639_v32, %v591_v31 }
  0xce   : > { %673 = vst [vmem:[%s1125_s25 + $0x20] sm:$0xff] %v640_v34 }
  0xcf   : > { %v610_v35 = vpop.f32.mrf.mxu2 }
  0xd0   : > { %v611_v36 = vadd.f32 %v1117_v33, %v610_v35  ;;  %v659_v37 = vpop.f32.mrf.mxu3 }
  0xd1   : > { %v592_v38 = vpop.f32.mrf.mxu0 }
  0xd2   : > { %v660_v39 = vadd.f32 %v659_v37, %v611_v36  ;;  %v593_v40 = vadd.f32 %v1117_v33, %v592_v38  ;;  %v641_v41 = vpop.f32.mrf.mxu1 }
  0xd4   : > { %681 = vst [vmem:[%s1125_s25 + $0x60] sm:$0xff] %v660_v39  ;;  %v642_v42 = vadd.f32 %v641_v41, %v593_v40 }
  0xd6   : > { %674 = vst [vmem:[%s1125_s25 + $0x28] sm:$0xff] %v642_v42 }
  0xd7   : > { %v612_v43 = vpop.f32.mrf.mxu2 }
  0xd8   : > { %v613_v44 = vadd.f32 %v1117_v33, %v612_v43  ;;  %v661_v45 = vpop.f32.mrf.mxu3 }
  0xd9   : > { %v595_v13 = vpop.f32.mrf.mxu0 }
  0xda   : > { %v662_v46 = vadd.f32 %v661_v45, %v613_v44  ;;  %v596_v47 = vadd.f32 %v1117_v33, %v595_v13  ;;  %v644_v48 = vpop.f32.mrf.mxu1 }
  0xdc   : > { %682 = vst [vmem:[%s1125_s25 + $0x68] sm:$0xff] %v662_v46  ;;  %v645_v49 = vadd.f32 %v644_v48, %v596_v47 }
  0xde   : > { %675 = vst [vmem:[%s1125_s25 + $0x30] sm:$0xff] %v645_v49 }
  0xdf   : > { %v615_v50 = vpop.f32.mrf.mxu2 }
  0xe0   : > { %v616_v51 = vadd.f32 %v1117_v33, %v615_v50  ;;  %v664_v21 = vpop.f32.mrf.mxu3 }
  0xe1   : > { %v597_v52 = vpop.f32.mrf.mxu0 }
  0xe2   : > { %v665_v53 = vadd.f32 %v664_v21, %v616_v51  ;;  %v598_v54 = vadd.f32 %v1117_v33, %v597_v52  ;;  %v646_v55 = vpop.f32.mrf.mxu1 }
  0xe4   : > { %683 = vst [vmem:[%s1125_s25 + $0x70] sm:$0xff] %v665_v53  ;;  %v647_v56 = vadd.f32 %v646_v55, %v598_v54 }
  0xe6   : > { %676 = vst [vmem:[%s1125_s25 + $0x38] sm:$0xff] %v647_v56 }
  0xe7   : > { %v617_v57 = vpop.f32.mrf.mxu2 }
  0xe8   : > { %v618_v26 = vadd.f32 %v1117_v33, %v617_v57  ;;  %v666_v58 = vpop.f32.mrf.mxu3 }
  0xea   : > { %v667_v59 = vadd.f32 %v666_v58, %v618_v26 }
  0xec   : > { %684 = vst [vmem:[%s1125_s25 + $0x78] sm:$0xff] %v667_v59 }
  0xed PF: > { %s15_s20 = sadd.s32 1, %s912_s20   ;;  %s1173_s18 = smov %s908_s19 }
  0xee   : > { %p12_p5 = scmp.ge.s32.totalorder %s15_s20, 5   ;;  %s1174_s19 = smov %s1176_s21 }
  0xf0   :  { %14 = sbr.rel (!%p12_p5) target bundleno = 2 (0x2), region = 70 }

// kernel: b2d_2d_forward.4
= control target key start
LH: loop header
LB: loop body
LE: loop exit
PB: predicated region body
PF: predicated region fallthrough
CT: control target
= control target key end

     0   :  { %s1711_s21 = smov 0   ;;  %s1713_s22 = smov 0   ;;  %s2401_s0 = inlined_call_operand.vmem [shape: bf16[384,256], index: 0, kind: input, shape index: {}]   ;;  %s2402_s1 = inlined_call_operand.vmem [shape: f32[1,256], index: 1, kind: input, shape index: {}]   ;;  %s2403_s2 = inlined_call_operand.vmem [shape: f32[1,256], index: 2, kind: input, shape index: {}]   ;;  %s2404_s3 = inlined_call_operand.vmem [shape: bf16[256,256], index: 3, kind: input, shape index: {}]   ;;  %s2405_s4 = inlined_call_operand.vmem [shape: bf16[384,256], index: 4, kind: output, shape index: {0}]   ;;  %s2406_s5 = inlined_call_operand.vmem [shape: f32[1,256], index: 5, kind: output, shape index: {1}]   ;;  %s2407_s6 = inlined_call_operand.vmem [shape: f32[1,256], index: 6, kind: output, shape index: {2}]  }
   0x1   :  { %s1715_s23 = smov 0  }
   0x2 LB: > { %s26_s24 = sadd.s32 1, %s1669_s22  ;;  %p1448_p0 = scmp.ge.s32.totalorder %s1673_s23, 1  ;;  %s1673_s23 = sphi %s1715_s23, %s17_s23   ;;  %s1669_s22 = sphi %s1713_s22, %s2423_s22   ;;  %s1665_s21 = sphi %s1711_s21, %s2422_s21  }
   0x3   : > { %p27_p1 = scmp.ge.s32.totalorder %s26_s24, 3  ;;  %p243_p2 = scmp.lt.s32.totalorder %s1673_s23, 4 }
   0x5   : > { %s2425_s24 = smov (%p27_p1, %s26_s24), 0  ;;  %p244_p3 = pnand %p1448_p0, %p243_p2 }
   0x7   : > { %247 = sbr.rel (%p244_p3) target bundleno = 384 (0x180), region = 36 }
   0xc   : > { %s1449_s25 = sshll.u32 %s1665_s21, 4  ;;  %p1455_p5 = scmp.ne.s32.totalorder %s1665_s21, 0 }
   0xd   : > { %p290_p4 = scmp.lt.s32.totalorder %s1449_s25, 47 }
   0xe   : > { %322 = sbr.rel (%p1455_p5) target bundleno = 24 (0x18), region = 40 }
   0xf   : > { %s2427_s25 = smov (!%p290_p4, %s1449_s25), 47 }
  0x10   : > { %s1591_s26 = sshll.u32 %s2427_s25, 3 }
  0x11   : > { %s1735_s29 = scalar_lea.vmem %s2401_s0, %s1591_s26  ;;  %s1740_s8 = scalar_lea.vmem %s2405_s4, %s1591_s26 }
  0x13   : > { %v323_v0 = vlaneseq  ;;  %v1675_v1 = vmov 0.0  }
  0x15   : > { %vm325_vm0 = vcmp.lt.s32.totalorder %v323_v0, 256 }
  0x16   : > { %327 = vst.msk [vmem:[%s2406_s5] sm:$0x3] %vm325_vm0, %v1675_v1 }
  0x17   : > { %328 = vst.msk [vmem:[%s2407_s6] sm:$0x3] %vm325_vm0, %v1675_v1 }
  0x18 PF: > { %v1514_v2 = vld [vmem:[%s2404_s3 + $0x70] sm:$0xf]  ;;  %v1608_v3 = vld [vmem:[%s2404_s3 + $0x74] sm:$0xf0]  ;;  %v1607_v7 = vld [vmem:[%s2404_s3 + $0x74] sm:$0xf] }
  0x19   : > { %v1578_v4 = vld [vmem:[%s2404_s3 + $0xf0] sm:$0xf]  ;;  %v1515_v5 = vor.u32 %v1608_v3, %v1514_v2  ;;  %v1624_v6 = vld [vmem:[%s2404_s3 + $0xf4] sm:$0xf0]  ;;  %v1516_v8 = vld [vmem:[%s2404_s3 + $0x78] sm:$0xf0] }
  0x1a   : > { %v1579_v9 = vor.u32 %v1624_v6, %v1578_v4  ;;  %v1519_v10 = vor.u32 %v1607_v7, %v1516_v8  ;;  %v1623_v11 = vld [vmem:[%s2404_s3 + $0xf4] sm:$0xf]  ;;  %v1580_v12 = vld [vmem:[%s2404_s3 + $0xf8] sm:$0xf0]  ;;  %v1506_v13 = vld [vmem:[%s2404_s3 + $0x60] sm:$0xf] }
  0x1b   : > { %693 = vmatpush.bf16.msra.mxu0 %v1515_v5  ;;  %v1583_v14 = vor.u32 %v1623_v11, %v1580_v12  ;;  %v1606_v15 = vld [vmem:[%s2404_s3 + $0x64] sm:$0xf0]  ;;  %v1570_v16 = vld [vmem:[%s2404_s3 + $0xe0] sm:$0xf]  ;;  %v1605_v20 = vld [vmem:[%s2404_s3 + $0x64] sm:$0xf] }
  0x1c   : > { %v1622_v17 = vld [vmem:[%s2404_s3 + $0xe4] sm:$0xf0]  ;;  %742 = vmatpush.bf16.msra.mxu1 %v1579_v9  ;;  %791 = vmatpush.bf16.msra.mxu2 %v1519_v10  ;;  %v1507_v18 = vor.u32 %v1606_v15, %v1506_v13  ;;  %v1508_v21 = vld [vmem:[%s2404_s3 + $0x68] sm:$0xf0]  ;;  %v1621_v22 = vld [vmem:[%s2404_s3 + $0xe4] sm:$0xf] }
  0x1d   : > { %v1571_v19 = vor.u32 %v1622_v17, %v1570_v16  ;;  %840 = vmatpush.bf16.msra.mxu3 %v1583_v14  ;;  %v1511_v23 = vor.u32 %v1605_v20, %v1508_v21  ;;  %v1572_v24 = vld [vmem:[%s2404_s3 + $0xe8] sm:$0xf0]  ;;  %v1498_v25 = vld [vmem:[%s2404_s3 + $0x50] sm:$0xf]  ;;  %v1604_v26 = vld [vmem:[%s2404_s3 + $0x54] sm:$0xf0] }
  0x1e   : > { %v1575_v27 = vor.u32 %v1621_v22, %v1572_v24  ;;  %v1562_v28 = vld [vmem:[%s2404_s3 + $0xd0] sm:$0xf]  ;;  %v1620_v29 = vld [vmem:[%s2404_s3 + $0xd4] sm:$0xf0]  ;;  %v1603_v30 = vld [vmem:[%s2404_s3 + $0x54] sm:$0xf]  ;;  %v1499_v31 = vor.u32 %v1604_v26, %v1498_v25 }
  0x1f   : > { %694 = vmatpush.bf16.msra.mxu0 %v1507_v18  ;;  %v1500_v32 = vld [vmem:[%s2404_s3 + $0x58] sm:$0xf0]  ;;  %v1619_v33 = vld [vmem:[%s2404_s3 + $0xd4] sm:$0xf]  ;;  %v1563_v35 = vor.u32 %v1620_v29, %v1562_v28  ;;  %v1490_v37 = vld [vmem:[%s2404_s3 + $0x40] sm:$0xf] }
  0x20   : > { %v1564_v34 = vld [vmem:[%s2404_s3 + $0xd8] sm:$0xf0]  ;;  %743 = vmatpush.bf16.msra.mxu1 %v1571_v19  ;;  %792 = vmatpush.bf16.msra.mxu2 %v1511_v23  ;;  %v1503_v36 = vor.u32 %v1603_v30, %v1500_v32  ;;  %v1602_v38 = vld [vmem:[%s2404_s3 + $0x44] sm:$0xf0]  ;;  %v1554_v39 = vld [vmem:[%s2404_s3 + $0xc0] sm:$0xf] }
  0x21   : > { %841 = vmatpush.bf16.msra.mxu3 %v1575_v27  ;;  %v1567_v40 = vor.u32 %v1619_v33, %v1564_v34  ;;  %v1618_v41 = vld [vmem:[%s2404_s3 + $0xc4] sm:$0xf0]  ;;  %v1601_v42 = vld [vmem:[%s2404_s3 + $0x44] sm:$0xf]  ;;  %v1492_v43 = vld [vmem:[%s2404_s3 + $0x48] sm:$0xf0]  ;;  %v1491_v46 = vor.u32 %v1602_v38, %v1490_v37 }
  0x22   : > { %v1617_v44 = vld [vmem:[%s2404_s3 + $0xc4] sm:$0xf]  ;;  %v1556_v45 = vld [vmem:[%s2404_s3 + $0xc8] sm:$0xf0]  ;;  %v1555_v47 = vor.u32 %v1618_v41, %v1554_v39  ;;  %v1495_v48 = vor.u32 %v1601_v42, %v1492_v43  ;;  %v1482_v49 = vld [vmem:[%s2404_s3 + $0x30] sm:$0xf] }
  0x23   : > { %695 = vmatpush.bf16.msra.mxu0 %v1499_v31  ;;  %v1600_v50 = vld [vmem:[%s2404_s3 + $0x34] sm:$0xf0]  ;;  %v1546_v51 = vld [vmem:[%s2404_s3 + $0xb0] sm:$0xf]  ;;  %v1559_v52 = vor.u32 %v1617_v44, %v1556_v45  ;;  %v1599_v54 = vld [vmem:[%s2404_s3 + $0x34] sm:$0xf] }
  0x24   : > { %744 = vmatpush.bf16.msra.mxu1 %v1563_v35  ;;  %793 = vmatpush.bf16.msra.mxu2 %v1503_v36  ;;  %v1616_v53 = vld [vmem:[%s2404_s3 + $0xb4] sm:$0xf0]  ;;  %v1484_v55 = vld [vmem:[%s2404_s3 + $0x38] sm:$0xf0]  ;;  %v1615_v56 = vld [vmem:[%s2404_s3 + $0xb4] sm:$0xf]  ;;  %v1483_v58 = vor.u32 %v1600_v50, %v1482_v49 }
  0x25   : > { %842 = vmatpush.bf16.msra.mxu3 %v1567_v40  ;;  %v1548_v57 = vld [vmem:[%s2404_s3 + $0xb8] sm:$0xf0]  ;;  %v1474_v59 = vld [vmem:[%s2404_s3 + $0x20] sm:$0xf]  ;;  %v1547_v60 = vor.u32 %v1616_v53, %v1546_v51  ;;  %v1487_v61 = vor.u32 %v1599_v54, %v1484_v55  ;;  %v1598_v62 = vld [vmem:[%s2404_s3 + $0x24] sm:$0xf0] }
  0x26   : > { %v1538_v63 = vld [vmem:[%s2404_s3 + $0xa0] sm:$0xf]  ;;  %v1614_v0 = vld [vmem:[%s2404_s3 + $0xa4] sm:$0xf0]  ;;  %v1551_v1 = vor.u32 %v1615_v56, %v1548_v57  ;;  %v1597_v2 = vld [vmem:[%s2404_s3 + $0x24] sm:$0xf]  ;;  %v1475_v8 = vor.u32 %v1598_v62, %v1474_v59 }
  0x27   : > { %696 = vmatpush.bf16.msra.mxu0 %v1491_v46  ;;  %v1476_v3 = vld [vmem:[%s2404_s3 + $0x28] sm:$0xf0]  ;;  %v1613_v4 = vld [vmem:[%s2404_s3 + $0xa4] sm:$0xf]  ;;  %v1466_v6 = vld [vmem:[%s2404_s3 + $0x10] sm:$0xf]  ;;  %v1539_v12 = vor.u32 %v1614_v0, %v1538_v63 }
  0x28   : > { %745 = vmatpush.bf16.msra.mxu1 %v1555_v47  ;;  %794 = vmatpush.bf16.msra.mxu2 %v1495_v48  ;;  %v1540_v5 = vld [vmem:[%s2404_s3 + $0xa8] sm:$0xf0]  ;;  %v1596_v7 = vld [vmem:[%s2404_s3 + $0x14] sm:$0xf0]  ;;  %v1530_v9 = vld [vmem:[%s2404_s3 + $0x90] sm:$0xf]  ;;  %v1479_v13 = vor.u32 %v1597_v2, %v1476_v3 }
  0x29   : > { %843 = vmatpush.bf16.msra.mxu3 %v1559_v52  ;;  %v1612_v10 = vld [vmem:[%s2404_s3 + $0x94] sm:$0xf0]  ;;  %v1595_v11 = vld [vmem:[%s2404_s3 + $0x14] sm:$0xf]  ;;  %v1468_v14 = vld [vmem:[%s2404_s3 + $0x18] sm:$0xf0]  ;;  %v1543_v17 = vor.u32 %v1613_v4, %v1540_v5  ;;  %v1467_v21 = vor.u32 %v1596_v7, %v1466_v6 }
  0x2a   : > { %v1611_v15 = vld [vmem:[%s2404_s3 + $0x94] sm:$0xf]  ;;  %v1532_v16 = vld [vmem:[%s2404_s3 + $0x98] sm:$0xf0]  ;;  %v1458_v18 = vld [vmem:[%s2404_s3] sm:$0xf]  ;;  %v1531_v33 = vor.u32 %v1612_v10, %v1530_v9  ;;  %v1471_v34 = vor.u32 %v1595_v11, %v1468_v14 }
  0x2b   : > { %697 = vmatpush.bf16.msra.mxu0 %v1483_v58  ;;  %v329_v19 = vld [vmem:[%s1735_s29] sm:$0xff]  ;;  %v330_v20 = vld [vmem:[%s1735_s29 + $0x8] sm:$0xff]  ;;  %v1535_v35 = vor.u32 %v1611_v15, %v1532_v16  ;;  %v331_v51 = vld [vmem:[%s1735_s29 + $0x10] sm:$0xff]  ;;  %p1059_p6 = scmp.eq.s32.totalorder %s1665_s21, 2  ;;  %vm967_vm1 = vcmask 1040384  }
  0x2c   : > { %746 = vmatpush.bf16.msra.mxu1 %v1547_v60  ;;  %795 = vmatpush.bf16.msra.mxu2 %v1487_v61  ;;  %v1594_v22 = vld [vmem:[%s2404_s3 + $0x4] sm:$0xf0]  ;;  %v345_v23 = vunpack.c.l.bf16 %v329_v19  ;;  %v347_v24 = vunpack.c.l.bf16 %v330_v20  ;;  %v377_v25 = vld [vmem:[%s2402_s1] sm:$0x3]  ;;  %v346_v27 = vunpack.c.h.bf16 %v329_v19  ;;  %v348_v31 = vunpack.c.h.bf16 %v330_v20  ;;  %v1593_v37 = vld [vmem:[%s2404_s3 + $0x4] sm:$0xf] }
  0x2d   : > { %844 = vmatpush.bf16.msra.mxu3 %v1551_v1  ;;  %v415_v26 = vld [vmem:[%s2403_s2] sm:$0x3]  ;;  %v1934_v29 = vperm.slane %v377_v25, 0  ;;  %v1938_v32 = vperm.slane %v377_v25, 1  ;;  %v1610_v36 = vld [vmem:[%s2404_s3 + $0x84] sm:$0xf0]  ;;  %v1459_v46 = vor.u32 %v1594_v22, %v1458_v18  ;;  %v349_v60 = vunpack.c.l.bf16 %v331_v51 }
  0x2e   : > { %v1522_v28 = vld [vmem:[%s2404_s3 + $0x80] sm:$0xf]  ;;  %v1936_v30 = vperm.slane %v415_v26, 0  ;;  %v1946_v38 = vperm.slane %v415_v26, 1  ;;  %v1460_v39 = vld [vmem:[%s2404_s3 + $0x8] sm:$0xf0]  ;;  %v350_v0 = vunpack.c.h.bf16 %v331_v51 }
  0x2f   : > { %698 = vmatpush.bf16.msra.mxu0 %v1475_v8  ;;  %v1609_v40 = vld [vmem:[%s2404_s3 + $0x84] sm:$0xf]  ;;  %v1524_v41 = vld [vmem:[%s2404_s3 + $0x88] sm:$0xf0]  ;;  %v383_v42 = vmul.f32 %v1934_v29, %v345_v23  ;;  %v385_v43 = vmul.f32 %v1934_v29, %v347_v24  ;;  %v384_v44 = vmul.f32 %v1938_v32, %v346_v27  ;;  %v386_v45 = vmul.f32 %v1938_v32, %v348_v31  ;;  %v332_v52 = vld [vmem:[%s1735_s29 + $0x18] sm:$0xff] }
  0x30   : > { %747 = vmatpush.bf16.msra.mxu1 %v1539_v12  ;;  %796 = vmatpush.bf16.msra.mxu2 %v1479_v13  ;;  %v1523_v53 = vor.u32 %v1610_v36, %v1522_v28  ;;  %v1463_v54 = vor.u32 %v1593_v37, %v1460_v39  ;;  %v1527_v55 = vor.u32 %v1609_v40, %v1524_v41  ;;  %v351_v61 = vunpack.c.l.bf16 %v332_v52  ;;  %v333_v14 = vld [vmem:[%s1735_s29 + $0x20] sm:$0xff]  ;;  %v334_v15 = vld [vmem:[%s1735_s29 + $0x28] sm:$0xff]  ;;  %v335_v37 = vld [vmem:[%s1735_s29 + $0x30] sm:$0xff] }
  0x31   : > { %845 = vmatpush.bf16.msra.mxu3 %v1543_v17  ;;  %v421_v47 = vadd.f32 %v1936_v30, %v383_v42  ;;  %v423_v48 = vadd.f32 %v1936_v30, %v385_v43  ;;  %v422_v49 = vadd.f32 %v1946_v38, %v384_v44  ;;  %v424_v50 = vadd.f32 %v1946_v38, %v386_v45  ;;  %v336_v39 = vld [vmem:[%s1735_s29 + $0x38] sm:$0xff] }
  0x32   : > { %v352_v1 = vunpack.c.h.bf16 %v332_v52  ;;  %v387_v2 = vmul.f32 %v1934_v29, %v349_v60  ;;  %v389_v3 = vmul.f32 %v1934_v29, %v351_v61  ;;  %v388_v4 = vmul.f32 %v1938_v32, %v350_v0 }
  0x33   : > { %699 = vmatpush.bf16.msra.mxu0 %v1467_v21  ;;  %v453_v56 = vmax.f32 %v421_v47, 0.0  ;;  %v455_v57 = vmax.f32 %v423_v48, 0.0  ;;  %v454_v58 = vmax.f32 %v422_v49, 0.0  ;;  %v456_v59 = vmax.f32 %v424_v50, 0.0 }
  0x34   : > { %748 = vmatpush.bf16.msra.mxu1 %v1531_v33  ;;  %797 = vmatpush.bf16.msra.mxu2 %v1471_v34  ;;  %v390_v5 = vmul.f32 %v1938_v32, %v352_v1  ;;  %v425_v6 = vadd.f32 %v1936_v30, %v387_v2  ;;  %v427_v7 = vadd.f32 %v1936_v30, %v389_v3  ;;  %v353_v17 = vunpack.c.l.bf16 %v333_v14 }
  0x35   : > { %846 = vmatpush.bf16.msra.mxu3 %v1535_v35  ;;  %v485_v62 = vpack.c.bf16 %v455_v57, %v453_v56  ;;  %v486_v63 = vpack.c.bf16 %v456_v59, %v454_v58  ;;  %v426_v8 = vadd.f32 %v1946_v38, %v388_v4  ;;  %v355_v18 = vunpack.c.l.bf16 %v334_v15  ;;  %v337_v58 = vld [vmem:[%s1735_s29 + $0x40] sm:$0xff]  ;;  %v338_v59 = vld [vmem:[%s1735_s29 + $0x48] sm:$0xff] }
  0x36   : > { %v428_v9 = vadd.f32 %v1946_v38, %v390_v5  ;;  %v457_v10 = vmax.f32 %v425_v6, 0.0  ;;  %v459_v11 = vmax.f32 %v427_v7, 0.0  ;;  %v354_v20 = vunpack.c.h.bf16 %v333_v14  ;;  %v339_v14 = vld [vmem:[%s1735_s29 + $0x50] sm:$0xff] }
  0x37   : > { %700 = vmatpush.bf16.msra.mxu0 %v1459_v46  ;;  %v458_v12 = vmax.f32 %v426_v8, 0.0  ;;  %v356_v21 = vunpack.c.h.bf16 %v334_v15  ;;  %v391_v22 = vmul.f32 %v1934_v29, %v353_v17  ;;  %v393_v23 = vmul.f32 %v1934_v29, %v355_v18  ;;  %v340_v15 = vld [vmem:[%s1735_s29 + $0x58] sm:$0xff] }
  0x38   : > { %749 = vmatpush.bf16.msra.mxu1 %v1523_v53  ;;  %798 = vmatpush.bf16.msra.mxu2 %v1463_v54  ;;  %v460_v13 = vmax.f32 %v428_v9, 0.0  ;;  %v487_v16 = vpack.c.bf16 %v459_v11, %v457_v10  ;;  %v392_v24 = vmul.f32 %v1938_v32, %v354_v20  ;;  %v357_v41 = vunpack.c.l.bf16 %v335_v37 }
  0x39   : > { %847 = vmatpush.bf16.msra.mxu3 %v1527_v55  ;;  %v394_v25 = vmul.f32 %v1938_v32, %v356_v21  ;;  %v429_v26 = vadd.f32 %v1936_v30, %v391_v22  ;;  %v431_v27 = vadd.f32 %v1936_v30, %v393_v23  ;;  %v359_v42 = vunpack.c.l.bf16 %v336_v39 }
  0x3a   : > { %701 = vmatmul.bf16.vlgmr.msra.gmra.mxu0 %v485_v62  ;;  %v488_v19 = vpack.c.bf16 %v460_v13, %v458_v12  ;;  %v430_v28 = vadd.f32 %v1946_v38, %v392_v24  ;;  %v358_v44 = vunpack.c.h.bf16 %v335_v37  ;;  %v360_v45 = vunpack.c.h.bf16 %v336_v39  ;;  %v341_v37 = vld [vmem:[%s1735_s29 + $0x60] sm:$0xff]  ;;  %v342_v39 = vld [vmem:[%s1735_s29 + $0x68] sm:$0xff] }
  0x3b   : > { %750 = vmatmul.bf16.vlgmr.msra.gmra.mxu1 %v486_v63  ;;  %799 = vmatmul.bf16.vlgmr.msra.gmra.mxu2 %v485_v62  ;;  %v432_v31 = vadd.f32 %v1946_v38, %v394_v25  ;;  %v461_v33 = vmax.f32 %v429_v26, 0.0  ;;  %v463_v34 = vmax.f32 %v431_v27, 0.0  ;;  %v395_v46 = vmul.f32 %v1934_v29, %v357_v41 }
  0x3c   : > { %848 = vmatmul.bf16.vlgmr.msra.gmra.mxu3 %v486_v63  ;;  %v462_v35 = vmax.f32 %v430_v28, 0.0  ;;  %v397_v47 = vmul.f32 %v1934_v29, %v359_v42  ;;  %v396_v48 = vmul.f32 %v1938_v32, %v358_v44  ;;  %v398_v49 = vmul.f32 %v1938_v32, %v360_v45 }
  0x3d   : > { %v464_v36 = vmax.f32 %v432_v31, 0.0  ;;  %v489_v40 = vpack.c.bf16 %v463_v34, %v461_v33  ;;  %v433_v50 = vadd.f32 %v1936_v30, %v395_v46  ;;  %v361_v61 = vunpack.c.l.bf16 %v337_v58 }
  0x3e   : > { %v435_v51 = vadd.f32 %v1936_v30, %v397_v47  ;;  %v434_v52 = vadd.f32 %v1946_v38, %v396_v48  ;;  %v436_v53 = vadd.f32 %v1946_v38, %v398_v49  ;;  %v363_v62 = vunpack.c.l.bf16 %v338_v59 }
  0x3f   : > { %v490_v43 = vpack.c.bf16 %v464_v36, %v462_v35  ;;  %v465_v54 = vmax.f32 %v433_v50, 0.0  ;;  %v362_v0 = vunpack.c.h.bf16 %v337_v58  ;;  %v364_v1 = vunpack.c.h.bf16 %v338_v59  ;;  %v343_v58 = vld [vmem:[%s1735_s29 + $0x70] sm:$0xff]  ;;  %v344_v59 = vld [vmem:[%s1735_s29 + $0x78] sm:$0xff] }
  0x40   : > { %v467_v55 = vmax.f32 %v435_v51, 0.0  ;;  %v466_v56 = vmax.f32 %v434_v52, 0.0  ;;  %v468_v57 = vmax.f32 %v436_v53, 0.0  ;;  %v399_v2 = vmul.f32 %v1934_v29, %v361_v61 }
  0x41   : > { %v401_v3 = vmul.f32 %v1934_v29, %v363_v62  ;;  %v400_v4 = vmul.f32 %v1938_v32, %v362_v0  ;;  %v402_v5 = vmul.f32 %v1938_v32, %v364_v1  ;;  %v365_v17 = vunpack.c.l.bf16 %v339_v14 }
  0x42   : > { %v491_v60 = vpack.c.bf16 %v467_v55, %v465_v54  ;;  %v492_v63 = vpack.c.bf16 %v468_v57, %v466_v56  ;;  %v437_v6 = vadd.f32 %v1936_v30, %v399_v2  ;;  %v367_v18 = vunpack.c.l.bf16 %v340_v15 }
  0x43   : > { %v439_v7 = vadd.f32 %v1936_v30, %v401_v3  ;;  %v438_v8 = vadd.f32 %v1946_v38, %v400_v4  ;;  %v440_v9 = vadd.f32 %v1946_v38, %v402_v5  ;;  %v366_v20 = vunpack.c.h.bf16 %v339_v14 }
  0x44   : > { %v469_v10 = vmax.f32 %v437_v6, 0.0  ;;  %v368_v21 = vunpack.c.h.bf16 %v340_v15  ;;  %v403_v22 = vmul.f32 %v1934_v29, %v365_v17  ;;  %v405_v23 = vmul.f32 %v1934_v29, %v367_v18 }
  0x45   : > { %v471_v11 = vmax.f32 %v439_v7, 0.0  ;;  %v470_v12 = vmax.f32 %v438_v8, 0.0  ;;  %v472_v13 = vmax.f32 %v440_v9, 0.0  ;;  %v404_v24 = vmul.f32 %v1938_v32, %v366_v20 }
  0x46   : > { %v406_v25 = vmul.f32 %v1938_v32, %v368_v21  ;;  %v441_v26 = vadd.f32 %v1936_v30, %v403_v22  ;;  %v443_v27 = vadd.f32 %v1936_v30, %v405_v23  ;;  %v369_v41 = vunpack.c.l.bf16 %v341_v37 }
  0x47   : > { %v442_v28 = vadd.f32 %v1946_v38, %v404_v24  ;;  %v371_v42 = vunpack.c.l.bf16 %v342_v39  ;;  %v370_v44 = vunpack.c.h.bf16 %v341_v37  ;;  %v372_v45 = vunpack.c.h.bf16 %v342_v39 }
  0x48   : > { %v444_v31 = vadd.f32 %v1946_v38, %v406_v25  ;;  %v473_v33 = vmax.f32 %v441_v26, 0.0  ;;  %v475_v34 = vmax.f32 %v443_v27, 0.0  ;;  %v407_v46 = vmul.f32 %v1934_v29, %v369_v41 }
  0x49   : > { %v474_v35 = vmax.f32 %v442_v28, 0.0  ;;  %v409_v47 = vmul.f32 %v1934_v29, %v371_v42  ;;  %v408_v48 = vmul.f32 %v1938_v32, %v370_v44  ;;  %v410_v49 = vmul.f32 %v1938_v32, %v372_v45 }
  0x4a   : > { %706 = vmatmul.bf16.gmra.mxu0 %v487_v16  ;;  %v476_v36 = vmax.f32 %v444_v31, 0.0  ;;  %v445_v50 = vadd.f32 %v1936_v30, %v407_v46  ;;  %v373_v61 = vunpack.c.l.bf16 %v343_v58  ;;  %v375_v62 = vunpack.c.l.bf16 %v344_v59 }
  0x4b   : > { %755 = vmatmul.bf16.gmra.mxu1 %v488_v19  ;;  %804 = vmatmul.bf16.gmra.mxu2 %v487_v16  ;;  %v493_v16 = vpack.c.bf16 %v471_v11, %v469_v10  ;;  %v447_v51 = vadd.f32 %v1936_v30, %v409_v47  ;;  %v446_v52 = vadd.f32 %v1946_v38, %v408_v48  ;;  %v374_v0 = vunpack.c.h.bf16 %v343_v58 }
  0x4c   : > { %853 = vmatmul.bf16.gmra.mxu3 %v488_v19  ;;  %v494_v19 = vpack.c.bf16 %v472_v13, %v470_v12  ;;  %v448_v53 = vadd.f32 %v1946_v38, %v410_v49  ;;  %v477_v54 = vmax.f32 %v445_v50, 0.0  ;;  %v376_v1 = vunpack.c.h.bf16 %v344_v59 }
  0x4d   : > { %v479_v55 = vmax.f32 %v447_v51, 0.0  ;;  %v478_v56 = vmax.f32 %v446_v52, 0.0  ;;  %v411_v2 = vmul.f32 %v1934_v29, %v373_v61  ;;  %v413_v3 = vmul.f32 %v1934_v29, %v375_v62 }
  0x4e   : > { %v480_v57 = vmax.f32 %v448_v53, 0.0  ;;  %v412_v4 = vmul.f32 %v1938_v32, %v374_v0  ;;  %v414_v5 = vmul.f32 %v1938_v32, %v376_v1  ;;  %vm1087_vm3 = vcmask (%p1059_p6), 1043456  }
  0x4f   : > { %v449_v6 = vadd.f32 %v1936_v30, %v411_v2  ;;  %v451_v7 = vadd.f32 %v1936_v30, %v413_v3 }
  0x50   : > { %v450_v8 = vadd.f32 %v1946_v38, %v412_v4  ;;  %v452_v9 = vadd.f32 %v1946_v38, %v414_v5 }
  0x51   : > { %v481_v10 = vmax.f32 %v449_v6, 0.0  ;;  %v483_v11 = vmax.f32 %v451_v7, 0.0 }
  0x52   : > { %v482_v12 = vmax.f32 %v450_v8, 0.0  ;;  %v484_v13 = vmax.f32 %v452_v9, 0.0 }
  0x53   : > { %v499_v29 = vpack.c.bf16 %v483_v11, %v481_v10 }
  0x54   : > { %v500_v14 = vpack.c.bf16 %v484_v13, %v482_v12 }
  0x5a   : > { %711 = vmatmul.bf16.gmra.mxu0 %v489_v40 }
  0x5b   : > { %760 = vmatmul.bf16.gmra.mxu1 %v490_v43  ;;  %809 = vmatmul.bf16.gmra.mxu2 %v489_v40  ;;  %v495_v40 = vpack.c.bf16 %v475_v34, %v473_v33 }
  0x5c   : > { %858 = vmatmul.bf16.gmra.mxu3 %v490_v43  ;;  %v496_v43 = vpack.c.bf16 %v476_v36, %v474_v35 }
  0x6a   : > { %716 = vmatmul.bf16.gmra.mxu0 %v491_v60 }
  0x6b   : > { %765 = vmatmul.bf16.gmra.mxu1 %v492_v63  ;;  %814 = vmatmul.bf16.gmra.mxu2 %v491_v60  ;;  %v497_v60 = vpack.c.bf16 %v479_v55, %v477_v54 }
  0x6c   : > { %863 = vmatmul.bf16.gmra.mxu3 %v492_v63  ;;  %v498_v63 = vpack.c.bf16 %v480_v57, %v478_v56 }
  0x7a   : > { %721 = vmatmul.bf16.gmra.mxu0 %v493_v16 }
  0x7b   : > { %770 = vmatmul.bf16.gmra.mxu1 %v494_v19  ;;  %819 = vmatmul.bf16.gmra.mxu2 %v493_v16 }
  0x7c   : > { %868 = vmatmul.bf16.gmra.mxu3 %v494_v19 }
  0x8a   : > { %726 = vmatmul.bf16.gmra.mxu0 %v495_v40 }
  0x8b   : > { %775 = vmatmul.bf16.gmra.mxu1 %v496_v43  ;;  %824 = vmatmul.bf16.gmra.mxu2 %v495_v40 }
  0x8c   : > { %873 = vmatmul.bf16.gmra.mxu3 %v496_v43 }
  0x9a   : > { %731 = vmatmul.bf16.gmra.mxu0 %v497_v60 }
  0x9b   : > { %780 = vmatmul.bf16.gmra.mxu1 %v498_v63  ;;  %829 = vmatmul.bf16.gmra.mxu2 %v497_v60 }
  0x9c   : > { %878 = vmatmul.bf16.gmra.mxu3 %v498_v63 }
  0xaa   : > { %736 = vmatmul.bf16.gmra.mxu0 %v499_v29 }
  0xab   : > { %785 = vmatmul.bf16.gmra.mxu1 %v500_v14  ;;  %834 = vmatmul.bf16.gmra.mxu2 %v499_v29 }
  0xac   : > { %883 = vmatmul.bf16.gmra.mxu3 %v500_v14 }
  0xb7   : > { %v702_v32 = vpop.f32.mrf.mxu0 }
  0xb8   : > { %v751_v15 = vpop.f32.mrf.mxu1 }
  0xb9   : > { %v752_v16 = vadd.f32 %v751_v15, %v702_v32 }
  0xbb   : > { %v977_v38 = vmul.f32 %v752_v16, %v752_v16 }
  0xbe   : > { %v800_v17 = vpop.f32.mrf.mxu2 }
  0xbf   : > { %v849_v30 = vpop.f32.mrf.mxu3  ;;  %v704_v18 = vpop.f32.mrf.mxu0 }
  0xc0   : > { %v850_v19 = vadd.f32 %v849_v30, %v800_v17  ;;  %v753_v20 = vpop.f32.mrf.mxu1 }
  0xc1   : > { %v754_v21 = vadd.f32 %v753_v20, %v704_v18 }
  0xc2   : > { %v889_v22 = vpack.c.bf16 %v850_v19, %v752_v16  ;;  %v978_v35 = vmul.f32 %v850_v19, %v850_v19 }
  0xc3   : > { %v922_v23 = vadd.f32 %v754_v21, %v752_v16  ;;  %v979_v24 = vmul.f32 %v754_v21, %v754_v21 }
  0xc4   : > { %905 = vst [vmem:[%s1740_s8] sm:$0xff] %v889_v22 }
  0xc5   : > { %v1009_v25 = vadd.f32 %v979_v24, %v977_v38 }
  0xc6   : > { %v802_v26 = vpop.f32.mrf.mxu2 }
  0xc7   : > { %v851_v27 = vpop.f32.mrf.mxu3  ;;  %v707_v28 = vpop.f32.mrf.mxu0 }
  0xc8   : > { %v852_v31 = vadd.f32 %v851_v27, %v802_v26  ;;  %v756_v33 = vpop.f32.mrf.mxu1 }
  0xc9   : > { %v757_v34 = vadd.f32 %v756_v33, %v707_v28 }
  0xca   : > { %v890_v36 = vpack.c.bf16 %v852_v31, %v754_v21  ;;  %v943_v37 = vadd.f32 %v852_v31, %v850_v19  ;;  %v980_v39 = vmul.f32 %v852_v31, %v852_v31 }
  0xcb   : > { %v923_v40 = vadd.f32 %v922_v23, %v757_v34  ;;  %v981_v41 = vmul.f32 %v757_v34, %v757_v34 }
  0xcc   : > { %906 = vst [vmem:[%s1740_s8 + $0x8] sm:$0xff] %v890_v36  ;;  %v1030_v42 = vadd.f32 %v980_v39, %v978_v35 }
  0xcd   : > { %v1010_v43 = vadd.f32 %v1009_v25, %v981_v41 }
  0xce   : > { %v805_v44 = vpop.f32.mrf.mxu2 }
  0xcf   : > { %v854_v45 = vpop.f32.mrf.mxu3  ;;  %v709_v46 = vpop.f32.mrf.mxu0 }
  0xd0   : > { %v855_v47 = vadd.f32 %v854_v45, %v805_v44  ;;  %v758_v48 = vpop.f32.mrf.mxu1 }
  0xd1   : > { %v759_v49 = vadd.f32 %v758_v48, %v709_v46 }
  0xd2   : > { %v891_v50 = vpack.c.bf16 %v855_v47, %v757_v34  ;;  %v944_v51 = vadd.f32 %v943_v37, %v855_v47  ;;  %v982_v52 = vmul.f32 %v855_v47, %v855_v47 }
  0xd3   : > { %v924_v53 = vadd.f32 %v923_v40, %v759_v49  ;;  %v983_v54 = vmul.f32 %v759_v49, %v759_v49 }
  0xd4   : > { %907 = vst [vmem:[%s1740_s8 + $0x10] sm:$0xff] %v891_v50  ;;  %v1031_v55 = vadd.f32 %v1030_v42, %v982_v52 }
  0xd5   : > { %v1011_v56 = vadd.f32 %v1010_v43, %v983_v54 }
  0xd6   : > { %v807_v57 = vpop.f32.mrf.mxu2 }
  0xd7   : > { %v856_v58 = vpop.f32.mrf.mxu3  ;;  %v712_v59 = vpop.f32.mrf.mxu0 }
  0xd8   : > { %v857_v60 = vadd.f32 %v856_v58, %v807_v57  ;;  %v761_v61 = vpop.f32.mrf.mxu1 }
  0xd9   : > { %v762_v62 = vadd.f32 %v761_v61, %v712_v59 }
  0xda   : > { %v892_v63 = vpack.c.bf16 %v857_v60, %v759_v49  ;;  %v945_v0 = vadd.f32 %v944_v51, %v857_v60  ;;  %v984_v1 = vmul.f32 %v857_v60, %v857_v60 }
  0xdb   : > { %v2039_v2 = vadd.f32 %v924_v53, %v762_v62  ;;  %v985_v3 = vmul.f32 %v762_v62, %v762_v62 }
  0xdc   : > { %908 = vst [vmem:[%s1740_s8 + $0x18] sm:$0xff] %v892_v63  ;;  %v1032_v4 = vadd.f32 %v1031_v55, %v984_v1 }
  0xdd   : > { %v2042_v5 = vadd.f32 %v1011_v56, %v985_v3 }
  0xde   : > { %v810_v6 = vpop.f32.mrf.mxu2 }
  0xdf   : > { %v859_v7 = vpop.f32.mrf.mxu3  ;;  %v714_v8 = vpop.f32.mrf.mxu0 }
  0xe0   : > { %v860_v9 = vadd.f32 %v859_v7, %v810_v6  ;;  %v763_v10 = vpop.f32.mrf.mxu1 }
  0xe1   : > { %v2049_v16 = vadd.f32 %v763_v10, %v714_v8 }
  0xe2   : > { %v893_v11 = vpack.c.bf16 %v860_v9, %v762_v62  ;;  %v2044_v12 = vadd.f32 %v945_v0, %v860_v9  ;;  %v986_v13 = vmul.f32 %v860_v9, %v860_v9 }
  0xe3   : > { %v2100_v0 = vmul.f32 %v2049_v16, %v2049_v16  ;;  %v926_v3 = vadd.f32 %v2039_v2, %v2049_v16 }
  0xe4   : > { %909 = vst [vmem:[%s1740_s8 + $0x20] sm:$0xff] %v893_v11  ;;  %v2047_v29 = vadd.f32 %v1032_v4, %v986_v13 }
  0xe5   : > { %v1013_v11 = vadd.f32 %v2042_v5, %v2100_v0 }
  0xe6   : > { %v812_v14 = vpop.f32.mrf.mxu2 }
  0xe7   : > { %v861_v32 = vpop.f32.mrf.mxu3  ;;  %v717_v15 = vpop.f32.mrf.mxu0 }
  0xe8   : > { %v2051_v17 = vadd.f32 %v861_v32, %v812_v14  ;;  %v766_v30 = vpop.f32.mrf.mxu1 }
  0xe9   : > { %v2056_v21 = vadd.f32 %v766_v30, %v717_v15 }
  0xea   : > { %v894_v18 = vpack.c.bf16 %v2051_v17, %v2049_v16  ;;  %v2121_v14 = vmul.f32 %v2051_v17, %v2051_v17 }
  0xeb   : > { %v2106_v4 = vmul.f32 %v2056_v21, %v2056_v21  ;;  %v927_v13 = vadd.f32 %v926_v3, %v2056_v21 }
  0xec   : > { %910 = vst [vmem:[%s1740_s8 + $0x28] sm:$0xff] %v894_v18 }
  0xed   : > { %v1014_v15 = vadd.f32 %v1013_v11, %v2106_v4 }
  0xee   : > { %v815_v19 = vpop.f32.mrf.mxu2 }
  0xef   : > { %v864_v20 = vpop.f32.mrf.mxu3  ;;  %v719_v38 = vpop.f32.mrf.mxu0 }
  0xf0   : > { %v2058_v22 = vadd.f32 %v864_v20, %v815_v19  ;;  %v768_v23 = vpop.f32.mrf.mxu1  ;;  %v947_v19 = vadd.f32 %v2044_v12, %v2051_v17 }
  0xf1   : > { %v2063_v28 = vadd.f32 %v768_v23, %v719_v38 }
  0xf2   : > { %v895_v24 = vpack.c.bf16 %v2058_v22, %v2056_v21  ;;  %v2133_v18 = vmul.f32 %v2058_v22, %v2058_v22 }
  0xf3   : > { %v2117_v2 = vmul.f32 %v2063_v28, %v2063_v28  ;;  %v928_v30 = vadd.f32 %v927_v13, %v2063_v28 }
  0xf4   : > { %911 = vst [vmem:[%s1740_s8 + $0x30] sm:$0xff] %v895_v24  ;;  %v1034_v24 = vadd.f32 %v2047_v29, %v2121_v14 }
  0xf5   : > { %v1015_v20 = vadd.f32 %v1014_v15, %v2117_v2 }
  0xf6   : > { %v817_v25 = vpop.f32.mrf.mxu2 }
  0xf7   : > { %v866_v26 = vpop.f32.mrf.mxu3  ;;  %v722_v27 = vpop.f32.mrf.mxu0 }
  0xf8   : > { %v2065_v31 = vadd.f32 %v866_v26, %v817_v25  ;;  %v771_v33 = vpop.f32.mrf.mxu1 }
  0xf9   : > { %v2070_v39 = vadd.f32 %v771_v33, %v722_v27  ;;  %v948_v27 = vadd.f32 %v947_v19, %v2058_v22 }
  0xfa   : > { %v896_v34 = vpack.c.bf16 %v2065_v31, %v2063_v28  ;;  %v2148_v25 = vmul.f32 %v2065_v31, %v2065_v31 }
  0xfb   : > { %v2129_v5 = vmul.f32 %v2070_v39, %v2070_v39  ;;  %v929_v38 = vadd.f32 %v928_v30, %v2070_v39 }
  0xfc   : > { %912 = vst [vmem:[%s1740_s8 + $0x38] sm:$0xff] %v896_v34 }
  0xfd   : > { %v1016_v12 = vadd.f32 %v1015_v20, %v2129_v5 }
  0xfe   : > { %v820_v35 = vpop.f32.mrf.mxu2 }
  0xff   : > { %v869_v36 = vpop.f32.mrf.mxu3  ;;  %v724_v37 = vpop.f32.mrf.mxu0 }
 0x100   : > { %v2072_v40 = vadd.f32 %v869_v36, %v820_v35  ;;  %v773_v41 = vpop.f32.mrf.mxu1 }
 0x101   : > { %v2077_v46 = vadd.f32 %v773_v41, %v724_v37  ;;  %v1035_v37 = vadd.f32 %v1034_v24, %v2133_v18 }
 0x102   : > { %v897_v42 = vpack.c.bf16 %v2072_v40, %v2070_v39  ;;  %v2160_v29 = vmul.f32 %v2072_v40, %v2072_v40 }
 0x103   : > { %v2142_v23 = vmul.f32 %v2077_v46, %v2077_v46  ;;  %v930_v33 = vadd.f32 %v929_v38, %v2077_v46 }
 0x104   : > { %913 = vst [vmem:[%s1740_s8 + $0x40] sm:$0xff] %v897_v42 }
 0x106   : > { %v822_v43 = vpop.f32.mrf.mxu2 }
 0x107   : > { %v871_v44 = vpop.f32.mrf.mxu3  ;;  %v727_v45 = vpop.f32.mrf.mxu0 }
 0x108   : > { %v2079_v47 = vadd.f32 %v871_v44, %v822_v43  ;;  %v776_v48 = vpop.f32.mrf.mxu1  ;;  %v1017_v44 = vadd.f32 %v1016_v12, %v2142_v23 }
 0x109   : > { %v2084_v53 = vadd.f32 %v776_v48, %v727_v45 }
 0x10a   : > { %v898_v49 = vpack.c.bf16 %v2079_v47, %v2077_v46 }
 0x10b   : > { %v2155_v34 = vmul.f32 %v2084_v53, %v2084_v53  ;;  %v931_v45 = vadd.f32 %v930_v33, %v2084_v53 }
 0x10c   : > { %914 = vst [vmem:[%s1740_s8 + $0x48] sm:$0xff] %v898_v49  ;;  %v949_v49 = vadd.f32 %v948_v27, %v2065_v31 }
 0x10e   : > { %v825_v50 = vpop.f32.mrf.mxu2 }
 0x10f   : > { %v874_v51 = vpop.f32.mrf.mxu3  ;;  %v729_v52 = vpop.f32.mrf.mxu0 }
 0x110   : > { %v2086_v54 = vadd.f32 %v874_v51, %v825_v50  ;;  %v778_v55 = vpop.f32.mrf.mxu1  ;;  %v1036_v50 = vadd.f32 %v1035_v37, %v2148_v25  ;;  %v2176_v51 = vmul.f32 %v2079_v47, %v2079_v47 }
 0x111   : > { %v2091_v60 = vadd.f32 %v778_v55, %v729_v52  ;;  %v1018_v55 = vadd.f32 %v1017_v44, %v2155_v34 }
 0x112   : > { %v899_v56 = vpack.c.bf16 %v2086_v54, %v2084_v53 }
 0x113   : > { %v2170_v48 = vmul.f32 %v2091_v60, %v2091_v60 }
 0x114   : > { %915 = vst [vmem:[%s1740_s8 + $0x50] sm:$0xff] %v899_v56  ;;  %v932_v56 = vadd.f32 %v931_v45, %v2091_v60 }
 0x116   : > { %v827_v57 = vpop.f32.mrf.mxu2 }
 0x117   : > { %v876_v58 = vpop.f32.mrf.mxu3  ;;  %v732_v59 = vpop.f32.mrf.mxu0 }
 0x118   : > { %v2093_v61 = vadd.f32 %v876_v58, %v827_v57  ;;  %v781_v62 = vpop.f32.mrf.mxu1 }
 0x119   : > { %v2108_v8 = vadd.f32 %v781_v62, %v732_v59  ;;  %v950_v59 = vadd.f32 %v949_v49, %v2072_v40  ;;  %v1037_v62 = vadd.f32 %v1036_v50, %v2160_v29 }
 0x11a   : > { %v900_v63 = vpack.c.bf16 %v2093_v61, %v2091_v60  ;;  %v2205_v11 = vmul.f32 %v2093_v61, %v2093_v61 }
 0x11b   : > { %v2184_v57 = vmul.f32 %v2108_v8, %v2108_v8  ;;  %v933_v3 = vadd.f32 %v932_v56, %v2108_v8 }
 0x11c   : > { %916 = vst [vmem:[%s1740_s8 + $0x58] sm:$0xff] %v900_v63  ;;  %v2192_v63 = vmul.f32 %v2086_v54, %v2086_v54 }
 0x11e   : > { %v830_v1 = vpop.f32.mrf.mxu2 }
 0x11f   : > { %v879_v6 = vpop.f32.mrf.mxu3  ;;  %v734_v7 = vpop.f32.mrf.mxu0 }
 0x120   : > { %v2110_v9 = vadd.f32 %v879_v6, %v830_v1  ;;  %v783_v10 = vpop.f32.mrf.mxu1  ;;  %v1019_v1 = vadd.f32 %v1018_v55, %v2170_v48 }
 0x121   : > { %v2162_v41 = vadd.f32 %v783_v10, %v734_v7  ;;  %v951_v7 = vadd.f32 %v950_v59, %v2079_v47  ;;  %v1038_v10 = vadd.f32 %v1037_v62, %v2176_v51 }
 0x122   : > { %v901_v32 = vpack.c.bf16 %v2110_v9, %v2108_v8  ;;  %v2219_v12 = vmul.f32 %v2110_v9, %v2110_v9 }
 0x123   : > { %v2199_v6 = vmul.f32 %v2162_v41, %v2162_v41  ;;  %v934_v15 = vadd.f32 %v933_v3, %v2162_v41  ;;  %v952_v38 = vadd.f32 %v951_v7, %v2086_v54  ;;  %v1039_v24 = vadd.f32 %v1038_v10, %v2192_v63 }
 0x124   : > { %917 = vst [vmem:[%s1740_s8 + $0x60] sm:$0xff] %v901_v32  ;;  %v1020_v32 = vadd.f32 %v1019_v1, %v2184_v57 }
 0x125   : > { %v953_v37 = vadd.f32 %v952_v38, %v2093_v61 }
 0x126   : > { %v832_v26 = vpop.f32.mrf.mxu2  ;;  %v1021_v33 = vadd.f32 %v1020_v32, %v2199_v6 }
 0x127   : > { %v881_v35 = vpop.f32.mrf.mxu3  ;;  %v737_v36 = vpop.f32.mrf.mxu0  ;;  %v954_v55 = vadd.f32 %v953_v37, %v2110_v9 }
 0x128   : > { %v2164_v42 = vadd.f32 %v881_v35, %v832_v26  ;;  %v786_v43 = vpop.f32.mrf.mxu1 }
 0x129   : > { %v2186_v58 = vadd.f32 %v786_v43, %v737_v36  ;;  %v1040_v43 = vadd.f32 %v1039_v24, %v2205_v11 }
 0x12a   : > { %v902_v52 = vpack.c.bf16 %v2164_v42, %v2162_v41  ;;  %v2231_v45 = vmul.f32 %v2164_v42, %v2164_v42  ;;  %v955_v3 = vadd.f32 %v954_v55, %v2164_v42 }
 0x12b   : > { %v2211_v30 = vmul.f32 %v2186_v58, %v2186_v58  ;;  %v935_v35 = vadd.f32 %v934_v15, %v2186_v58  ;;  %v1041_v56 = vadd.f32 %v1040_v43, %v2219_v12 }
 0x12c   : > { %918 = vst [vmem:[%s1740_s8 + $0x68] sm:$0xff] %v902_v52 }
 0x12d   : > { %2412 = vst [vmem:[#allocation2_spill] sm:$0xff] %v2211_v30  ;;  %v1022_v49 = vadd.f32 %v1021_v33, %v2211_v30  ;;  %v1042_v10 = vadd.f32 %v1041_v56, %v2231_v45  ;;  %v971_v30 = vlaneseq }
 0x12e   : > { %v835_v13 = vpop.f32.mrf.mxu2  ;;  %2413 = vst [vmem:[#allocation3_spill] sm:$0xff] %v2231_v45 }
 0x12f   : > { %v884_v19 = vpop.f32.mrf.mxu3  ;;  %v739_v20 = vpop.f32.mrf.mxu0  ;;  %vm2266_vm2 = vcmp.lt.s32.totalorder %v971_v30, 256  ;;  %v1088_v30 = vrot.slane (%p1059_p6), %v2049_v16, 4  ;;  %v1102_v16 = vrot.slane (%p1059_p6), %v2077_v46, 4  ;;  %v1110_v46 = vrot.slane (%p1059_p6), %v2091_v60, 4 }
 0x130   : > { %v2215_v26 = vadd.f32 %v884_v19, %v835_v13  ;;  %v788_v27 = vpop.f32.mrf.mxu1 }
 0x131   : > { %v2223_v36 = vadd.f32 %v788_v27, %v739_v20 }
 0x132   : > { %v903_v44 = vpack.c.bf16 %v2215_v26, %v2186_v58  ;;  %v2244_v59 = vmul.f32 %v2215_v26, %v2215_v26  ;;  %v956_v15 = vadd.f32 %v955_v3, %v2215_v26 }
 0x133   : > { %v936_v50 = vadd.f32 %v935_v35, %v2223_v36  ;;  %v2237_v52 = vmul.f32 %v2223_v36, %v2223_v36 }
 0x134   : > { %919 = vst [vmem:[%s1740_s8 + $0x70] sm:$0xff] %v903_v44  ;;  %v1043_v38 = vadd.f32 %v1042_v10, %v2244_v59 }
 0x135   : > { %2414 = vst [vmem:[#allocation4_spill] sm:$0xff] %v2237_v52  ;;  %v937_v62 = vrot.slane %v936_v50, 4  ;;  %v1023_v1 = vadd.f32 %v1022_v49, %v2237_v52 }
 0x136   : > { %2415 = vst [vmem:[#allocation5_spill] sm:$0xff] %v2244_v59  ;;  %v837_v7 = vpop.f32.mrf.mxu2 }
 0x137   : > { %v1024_v13 = vrot.slane %v1023_v1, 4  ;;  %v886_v32 = vpop.f32.mrf.mxu3  ;;  %v938_v19 = vadd.f32 %v937_v62, %v936_v50 }
 0x138   : > { %v2250_v20 = vadd.f32 %v886_v32, %v837_v7 }
 0x139   : > { %v1025_v24 = vadd.f32 %v1024_v13, %v1023_v1  ;;  %v939_v37 = vrot.slane %v938_v19, 2 }
 0x13a   : > { %v904_v27 = vpack.c.bf16 %v2250_v20, %v2223_v36  ;;  %v957_v33 = vadd.f32 %v956_v15, %v2250_v20  ;;  %v2258_v35 = vmul.f32 %v2250_v20, %v2250_v20 }
 0x13b   : > { %v1026_v49 = vrot.slane %v1025_v24, 2  ;;  %v940_v56 = vadd.f32 %v939_v37, %v938_v19 }
 0x13c   : > { %920 = vst [vmem:[%s1740_s8 + $0x78] sm:$0xff] %v904_v27  ;;  %v958_v43 = vrot.slane %v957_v33, 4  ;;  %v1044_v44 = vadd.f32 %v1043_v38, %v2258_v35  ;;  %v921_v38 = vld [vmem:[%s2406_s5] sm:$0x3] }
 0x13d   : > { %v1027_v3 = vadd.f32 %v1026_v49, %v1025_v24  ;;  %v941_v13 = vrot.slane %v940_v56, 1 }
 0x13e   : > { %v959_v50 = vadd.f32 %v958_v43, %v957_v33  ;;  %v1045_v55 = vrot.slane %v1044_v44, 4 }
 0x13f   : > { %v1028_v52 = vrot.slane %v1027_v3, 1  ;;  %v942_v27 = vadd.f32 %v941_v13, %v940_v56  ;;  %v1091_v56 = vrot.slane (%p1059_p6), %v2051_v17, 4 }
 0x140   : > { %v960_v62 = vrot.slane %v959_v50, 2  ;;  %v1046_v1 = vadd.f32 %v1045_v55, %v1044_v44  ;;  %v976_v44 = vld [vmem:[%s2407_s6] sm:$0x3] }
 0x141   : > { %v1029_v37 = vadd.f32 %v1028_v52, %v1027_v3  ;;  %v1089_v52 = vrot.slane (%p1059_p6), %v2056_v21, 4  ;;  %v1098_v3 = vrot.slane (%p1059_p6), %v2070_v39, 4  ;;  %v1104_v21 = vrot.slane (%p1059_p6), %v2079_v47, 4 }
 0x142   : > { %v961_v7 = vadd.f32 %v960_v62, %v959_v50  ;;  %v1047_v10 = vrot.slane %v1046_v1, 2  ;;  %v1092_v62 = vrot.slane (%p1059_p6), %v2058_v22, 4 }
 0x144   : > { %v962_v32 = vrot.slane %v961_v7, 1  ;;  %v1048_v15 = vadd.f32 %v1047_v10, %v1046_v1  ;;  %v1096_v1 = vrot.slane (%p1059_p6), %v2065_v31, 4  ;;  %v1090_v10 = vsel (%p1059_p6), %vm1087_vm3, %v1088_v30, %v1089_v52 }
 0x145   : > { %v1106_v31 = vrot.slane (%p1059_p6), %v2084_v53, 4 }
 0x146   : > { %v963_v59 = vadd.f32 %v962_v32, %v961_v7  ;;  %v1049_v45 = vrot.slane %v1048_v15, 1  ;;  %v1100_v7 = vrot.slane (%p1059_p6), %v2072_v40, 4  ;;  %v1097_v17 = vsel (%p1059_p6), %vm1087_vm3, %v1092_v62, %v1096_v1 }
 0x147   : > { %v1108_v40 = vrot.slane (%p1059_p6), %v2086_v54, 4  ;;  %v1107_v53 = vsel (%p1059_p6), %vm1087_vm3, %v1102_v16, %v1106_v31 }
 0x148   : > { %v966_v33 = vrot.slane %v963_v59, 7  ;;  %v1050_v19 = vadd.f32 %v1049_v45, %v1048_v15  ;;  %v1094_v59 = vrot.slane (%p1059_p6), %v2063_v28, 4  ;;  %v1093_v28 = vsel (%p1059_p6), %vm1087_vm3, %v1091_v56, %v1092_v62 }
 0x149   : > { %v1101_v39 = vsel (%p1059_p6), %vm1087_vm3, %v1096_v1, %v1100_v7  ;;  %v1103_v15 = vsel (%p1059_p6), %vm1087_vm3, %v1098_v3, %v1102_v16  ;;  %v1169_v47 = vadd.f32 (%p1059_p6), %v1097_v17, %v1093_v28  ;;  %v1128_v62 = vrot.slane (%p1059_p6), %v2250_v20, 4 }
 0x14a   : > { %v968_v24 = vsel %vm967_vm1, %v942_v27, %v966_v33  ;;  %v1053_v49 = vrot.slane %v1050_v19, 7  ;;  %v1095_v13 = vsel (%p1059_p6), %vm1087_vm3, %v1089_v52, %v1094_v59  ;;  %v1099_v22 = vsel (%p1059_p6), %vm1087_vm3, %v1094_v59, %v1098_v3 }
 0x14b   : > { %v970_v50 = vadd.f32 %v968_v24, %v921_v38  ;;  %1063 = sbr.rel (!%p1059_p6) target bundleno = 384 (0x180), region = 44  ;;  %v1152_v32 = vadd.f32 (%p1059_p6), %v1095_v13, %v1090_v10  ;;  %v1105_v27 = vsel (%p1059_p6), %vm1087_vm3, %v1100_v7, %v1104_v21  ;;  %v1112_v38 = vrot.slane (%p1059_p6), %v2093_v61, 4 }
 0x14c   : > { %v1054_v55 = vsel %vm967_vm1, %v1029_v37, %v1053_v49  ;;  %v1114_v33 = vrot.slane (%p1059_p6), %v2108_v8, 4  ;;  %v1116_v19 = vrot.slane (%p1059_p6), %v2110_v9, 4  ;;  %v1118_v24 = vrot.slane (%p1059_p6), %v2162_v41, 4 }
 0x14d   : > { %975 = vst.msk [vmem:[%s2406_s5] sm:$0x3] %vm2266_vm2, %v970_v50  ;;  %v1056_v45 = vadd.f32 %v1054_v55, %v976_v44  ;;  %v1153_v37 = vadd.f32 (%p1059_p6), %v1152_v32, %v1099_v22  ;;  %v1170_v54 = vadd.f32 (%p1059_p6), %v1169_v47, %v1101_v39  ;;  %v1109_v44 = vsel (%p1059_p6), %vm1087_vm3, %v1104_v21, %v1108_v40 }
 0x14e   : > { %v1120_v49 = vrot.slane (%p1059_p6), %v2164_v42, 4  ;;  %v1122_v50 = vrot.slane (%p1059_p6), %v2186_v58, 4  ;;  %v1111_v55 = vsel (%p1059_p6), %vm1087_vm3, %v1106_v31, %v1110_v46  ;;  %v1113_v8 = vsel (%p1059_p6), %vm1087_vm3, %v1108_v40, %v1112_v38 }
 0x14f   : > { %1057 = vst.msk [vmem:[%s2407_s6] sm:$0x3] %vm2266_vm2, %v1056_v45  ;;  %v1154_v60 = vadd.f32 (%p1059_p6), %v1153_v37, %v1103_v15  ;;  %v1171_v61 = vadd.f32 (%p1059_p6), %v1170_v54, %v1105_v27  ;;  %v1115_v9 = vsel (%p1059_p6), %vm1087_vm3, %v1110_v46, %v1114_v33  ;;  %v1117_v45 = vsel (%p1059_p6), %vm1087_vm3, %v1112_v38, %v1116_v19 }
 0x150   : > { %v1119_v41 = vsel %vm1087_vm3, %v1114_v33, %v1118_v24  ;;  %v1124_v52 = vrot.slane %v2215_v26, 4  ;;  %v1126_v59 = vrot.slane %v2223_v36, 4  ;;  %v1121_v58 = vsel %vm1087_vm3, %v1116_v19, %v1120_v49 }
 0x151   : > { %v1155_v30 = vadd.f32 %v1154_v60, %v1107_v53  ;;  %v1172_v42 = vadd.f32 %v1171_v61, %v1109_v44  ;;  %v1123_v56 = vsel %vm1087_vm3, %v1118_v24, %v1122_v50  ;;  %v1216_v7 = vrot.slane %v2100_v0, 4 }
 0x152   : > { %v1217_v10 = vrot.slane %v2106_v4, 4  ;;  %v1222_v13 = vrot.slane %v2117_v2, 4  ;;  %v1219_v26 = vrot.slane %v2121_v14, 4  ;;  %v1220_v36 = vrot.slane %v2133_v18, 4 }
 0x153   : > { %v1156_v1 = vadd.f32 %v1155_v30, %v1111_v55  ;;  %v1173_v3 = vadd.f32 %v1172_v42, %v1113_v8  ;;  %v1224_v21 = vrot.slane %v2148_v25, 4  ;;  %v1125_v28 = vsel %vm1087_vm3, %v1120_v49, %v1124_v52  ;;  %v2418_v42 = vld [vmem:[#allocation3_spill] sm:$0xff] }
 0x154   : > { %v1127_v17 = vsel %vm1087_vm3, %v1122_v50, %v1126_v59  ;;  %v1226_v22 = vrot.slane %v2129_v5, 4  ;;  %v1129_v0 = vsel %vm1087_vm3, %v1124_v52, %v1128_v62  ;;  %v1161_v4 = vsel %vm1087_vm3, %v1126_v59, 0.0 }
 0x155   : > { %v1157_v16 = vadd.f32 %v1156_v1, %v1115_v9  ;;  %v1174_v20 = vadd.f32 %v1173_v3, %v1117_v45  ;;  %v1228_v2 = vrot.slane %v2160_v29, 4  ;;  %v1218_v14 = vsel %vm1087_vm3, %v1216_v7, %v1217_v10  ;;  %v2419_v1 = vld [vmem:[#allocation2_spill] sm:$0xff] }
 0x156   : > { %v1223_v18 = vsel %vm1087_vm3, %v1217_v10, %v1222_v13  ;;  %v1230_v25 = vrot.slane %v2142_v23, 4  ;;  %v1221_v32 = vsel %vm1087_vm3, %v1219_v26, %v1220_v36  ;;  %v1225_v15 = vsel %vm1087_vm3, %v1220_v36, %v1224_v21 }
 0x157   : > { %v1158_v31 = vadd.f32 %v1157_v16, %v1119_v41  ;;  %v1175_v39 = vadd.f32 %v1174_v20, %v1121_v58  ;;  %v1232_v5 = vrot.slane %v2176_v51, 4  ;;  %v1178_v46 = vsel %vm1087_vm3, %v1128_v62, 0.0 }
 0x158   : > { %v1227_v47 = vsel %vm1087_vm3, %v1222_v13, %v1226_v22  ;;  %v1234_v29 = vrot.slane %v2155_v34, 4  ;;  %v1229_v33 = vsel %vm1087_vm3, %v1224_v21, %v1228_v2  ;;  %v1236_v19 = vrot.slane %v2192_v63, 4  ;;  %v2420_v13 = vld [vmem:[#allocation5_spill] sm:$0xff]  ;;  %v2421_v21 = vld [vmem:[#allocation4_spill] sm:$0xff] }
 0x159   : > { %v1159_v40 = vadd.f32 %v1158_v31, %v1123_v56  ;;  %v1176_v27 = vadd.f32 %v1175_v39, %v1125_v28  ;;  %v1280_v23 = vadd.f32 %v1223_v18, %v1218_v14  ;;  %v1231_v53 = vsel %vm1087_vm3, %v1226_v22, %v1230_v25 }
 0x15a   : > { %v1238_v24 = vrot.slane %v2170_v48, 4  ;;  %v1297_v54 = vadd.f32 %v1225_v15, %v1221_v32  ;;  %v1233_v44 = vsel %vm1087_vm3, %v1228_v2, %v1232_v5  ;;  %v1240_v49 = vrot.slane %v2205_v11, 4 }
 0x15b   : > { %v1160_v38 = vadd.f32 %v1159_v40, %v1127_v17  ;;  %v1177_v37 = vadd.f32 %v1176_v27, %v1129_v0  ;;  %v1281_v50 = vadd.f32 %v1280_v23, %v1227_v47  ;;  %v1235_v34 = vsel %vm1087_vm3, %v1230_v25, %v1234_v29 }
 0x15c   : > { %v1242_v55 = vrot.slane %v2184_v57, 4  ;;  %v1298_v61 = vadd.f32 %v1297_v54, %v1229_v33  ;;  %v1237_v8 = vsel %vm1087_vm3, %v1232_v5, %v1236_v19  ;;  %v1244_v9 = vrot.slane %v2219_v12, 4 }
 0x15d   : > { %v1162_v51 = vadd.f32 %v1161_v4, %v1160_v38  ;;  %v1179_v60 = vadd.f32 %v1178_v46, %v1177_v37  ;;  %v1282_v45 = vadd.f32 %v1281_v50, %v1231_v53  ;;  %v1239_v30 = vsel %vm1087_vm3, %v1234_v29, %v1238_v24 }
 0x15e   : > { %v1246_v41 = vrot.slane %v2199_v6, 4  ;;  %v1299_v52 = vadd.f32 %v1298_v61, %v1233_v44  ;;  %v1241_v59 = vsel %vm1087_vm3, %v1236_v19, %v1240_v49  ;;  %v1248_v58 = vrot.slane %v2418_v42, 4  ;;  %v1064_v19 = vld [vmem:[%s2406_s5] sm:$0x3] }
 0x15f   : > { %v1163_v63 = vrot.slane %v1162_v51, 4  ;;  %v1180_v48 = vrot.slane %v1179_v60, 4  ;;  %v1283_v56 = vadd.f32 %v1282_v45, %v1235_v34  ;;  %v1243_v62 = vsel %vm1087_vm3, %v1238_v24, %v1242_v55 }
 0x160   : > { %v1250_v3 = vrot.slane %v2419_v1, 4  ;;  %v1300_v7 = vadd.f32 %v1299_v52, %v1237_v8  ;;  %v1245_v10 = vsel %vm1087_vm3, %v1240_v49, %v1244_v9  ;;  %v1252_v16 = vrot.slane %v2420_v13, 4 }
 0x161   : > { %v1164_v11 = vadd.f32 %v1163_v63, %v1162_v51  ;;  %v1181_v57 = vadd.f32 %v1180_v48, %v1179_v60  ;;  %v1284_v26 = vadd.f32 %v1283_v56, %v1239_v30  ;;  %v1247_v36 = vsel %vm1087_vm3, %v1242_v55, %v1246_v41  ;;  %v1193_v30 = vld [vmem:[%s2407_s6] sm:$0x3] }
 0x162   : > { %v1254_v28 = vrot.slane %v2421_v21, 4  ;;  %v1301_v17 = vadd.f32 %v1300_v7, %v1241_v59  ;;  %v1249_v22 = vsel %vm1087_vm3, %v1244_v9, %v1248_v58  ;;  %v1256_v0 = vrot.slane %v2258_v35, 4 }
 0x163   : > { %v1165_v12 = vrot.slane %v1164_v11, 2  ;;  %v1182_v6 = vrot.slane %v1181_v57, 2  ;;  %v1285_v31 = vadd.f32 %v1284_v26, %v1243_v62  ;;  %v1251_v2 = vsel %vm1087_vm3, %v1246_v41, %v1250_v3 }
 0x164   : > { %v1302_v39 = vadd.f32 %v1301_v17, %v1245_v10  ;;  %v1253_v18 = vsel %vm1087_vm3, %v1248_v58, %v1252_v16  ;;  %v1255_v32 = vsel %vm1087_vm3, %v1250_v3, %v1254_v28  ;;  %v1257_v5 = vsel %vm1087_vm3, %v1252_v16, %v1256_v0 }
 0x165   : > { %v1166_v20 = vadd.f32 %v1165_v12, %v1164_v11  ;;  %v1183_v4 = vadd.f32 %v1182_v6, %v1181_v57  ;;  %v1286_v25 = vadd.f32 %v1285_v31, %v1247_v36  ;;  %v1289_v35 = vsel %vm1087_vm3, %v1254_v28, 0.0 }
 0x166   : > { %v1303_v15 = vadd.f32 %v1302_v39, %v1249_v22  ;;  %v1306_v33 = vsel %vm1087_vm3, %v1256_v0, 0.0 }
 0x167   : > { %v1167_v14 = vrot.slane %v1166_v20, 1  ;;  %v1184_v40 = vrot.slane %v1183_v4, 1  ;;  %v1287_v27 = vadd.f32 %v1286_v25, %v1251_v2 }
 0x168   : > { %v1304_v29 = vadd.f32 %v1303_v15, %v1253_v18 }
 0x169   : > { %v1168_v46 = vadd.f32 %v1167_v14, %v1166_v20  ;;  %v1185_v47 = vadd.f32 %v1184_v40, %v1183_v4  ;;  %v1288_v38 = vadd.f32 %v1287_v27, %v1255_v32 }
 0x16a   : > { %v1305_v37 = vadd.f32 %v1304_v29, %v1257_v5 }
 0x16b   : > { %v1188_v23 = vrot.slane %v1185_v47, 7  ;;  %v1290_v53 = vadd.f32 %v1289_v35, %v1288_v38 }
 0x16c   : > { %v1307_v54 = vadd.f32 %v1306_v33, %v1305_v37 }
 0x16d   : > { %v1189_v24 = vsel %vm967_vm1, %v1168_v46, %v1188_v23  ;;  %v1291_v44 = vrot.slane %v1290_v53, 4 }
 0x16e   : > { %v1191_v51 = vsub.f32 %v1064_v19, %v1189_v24  ;;  %v1308_v49 = vrot.slane %v1307_v54, 4 }
 0x16f   : > { %v1292_v50 = vadd.f32 %v1291_v44, %v1290_v53 }
 0x170   : > { %1192 = vst.msk [vmem:[%s2406_s5] sm:$0x3] %vm2266_vm2, %v1191_v51  ;;  %v1309_v60 = vadd.f32 %v1308_v49, %v1307_v54 }
 0x171   : > { %v1293_v34 = vrot.slane %v1292_v50, 2 }
 0x172   : > { %v1310_v55 = vrot.slane %v1309_v60, 2 }
 0x173   : > { %v1294_v61 = vadd.f32 %v1293_v34, %v1292_v50 }
 0x174   : > { %v1311_v63 = vadd.f32 %v1310_v55, %v1309_v60 }
 0x175   : > { %v1295_v8 = vrot.slane %v1294_v61, 1 }
 0x176   : > { %v1312_v9 = vrot.slane %v1311_v63, 1 }
 0x177   : > { %v1296_v45 = vadd.f32 %v1295_v8, %v1294_v61 }
 0x178   : > { %v1313_v48 = vadd.f32 %v1312_v9, %v1311_v63 }
 0x17a   : > { %v1316_v41 = vrot.slane %v1313_v48, 7 }
 0x17c   : > { %v1317_v52 = vsel %vm967_vm1, %v1296_v45, %v1316_v41 }
 0x17d   : > { %v1319_v11 = vsub.f32 %v1193_v30, %v1317_v52 }
 0x17f   : > { %1320 = vst.msk [vmem:[%s2407_s6] sm:$0x3] %vm2266_vm2, %v1319_v11 }
 0x180 PF: > { %s17_s23 = sadd.s32 1, %s1673_s23   ;;  %s2422_s21 = smov %s1669_s22 }
 0x181   : > { %p14_p7 = scmp.ge.s32.totalorder %s17_s23, 5   ;;  %s2423_s22 = smov %s2425_s24 }
 0x183   :  { %16 = sbr.rel (!%p14_p7) target bundleno = 2 (0x2), region = 98 }

</bundles_post_ra>
